<compile_context>
chip_gen: v7x
topology: tpu7x:2x2x1
jax: 0.10.0
libtpu: 0.0.40
codegen_flags: <defaults>
</compile_context>

<pallas_src>
import functools

import jax
import jax.numpy as jnp
import numpy as np
from jax.experimental import pallas as pl
from jax.experimental.pallas import tpu as pltpu

EPS = 1e-5
LANE = 128                      # pad channel dims to multiples of this
MXU_DTYPE = jnp.bfloat16        # MXU input dtype (accumulation stays f32)
VMEM_LIMIT = 48 * 1024 * 1024   # explicit scoped-VMEM budget (safe on v5e/v6e/v7x)


def _round_up(x, m):
    return (x + m - 1) // m * m


def _compiler_params():
    return pltpu.CompilerParams(
        dimension_semantics=("parallel",),
        vmem_limit_bytes=VMEM_LIMIT,
    )


# ---------------------------------------------------------------------------
# Kernels
# ---------------------------------------------------------------------------
def _conv1_kernel(x_ref, w1_ref, y1_ref, s1_ref, *, s, Hph, Ho, Wo):
    """3x3 conv (stride s) for a block of B images as 9 shifted-window bf16
    matmuls over the phase-split padded input.  Emits the raw (pre-BN) conv
    output (bf16) plus per-block per-channel (sum, sum_sq) stats (f32)."""
    B = x_ref.shape[0]
    Cp = x_ref.shape[-1]
    Pp = w1_ref.shape[-1]
    M = B * Ho * Wo
    acc = jnp.zeros((M, Pp), jnp.float32)
    for kh in range(3):
        for kw in range(3):
            ph = (kh % s) * s + (kw % s)          # which phase holds this tap
            dh, dw = kh // s, kw // s             # offset inside the phase
            r0 = ph * Hph + dh                    # phases folded into the row dim
            tap = x_ref[:, r0:r0 + Ho, dw:dw + Wo, :].reshape(M, Cp)
            acc = acc + jnp.dot(tap, w1_ref[kh * 3 + kw],
                                preferred_element_type=jnp.float32)
    y1_ref[...] = acc.astype(y1_ref.dtype)
    s1_ref[0, 0:1, :] = jnp.sum(acc, axis=0, keepdims=True)
    s1_ref[0, 1:2, :] = jnp.sum(acc * acc, axis=0, keepdims=True)


def _conv1_proj_kernel(x_ref, w1_ref, ws_ref, y1_ref, s1_ref, ysc_ref, ssc_ref,
                       *, s, Hph, Ho, Wo):
    """conv1 + projection-shortcut (1x1, stride s) sharing the same loaded input."""
    _conv1_kernel(x_ref, w1_ref, y1_ref, s1_ref, s=s, Hph=Hph, Ho=Ho, Wo=Wo)
    # 1x1 stride-s conv picks xp[s*i+1, s*j+1] (== x[s*i, s*j]) from the phases.
    B = x_ref.shape[0]
    Cp = x_ref.shape[-1]
    M = B * Ho * Wo
    a = 1 % s
    d = (1 - a) // s
    r0 = (a * s + a) * Hph + d
    xs = x_ref[:, r0:r0 + Ho, d:d + Wo, :].reshape(M, Cp)
    r = jnp.dot(xs, ws_ref[...], preferred_element_type=jnp.float32)
    ysc_ref[...] = r
    ssc_ref[0, 0:1, :] = jnp.sum(r, axis=0, keepdims=True)
    ssc_ref[0, 1:2, :] = jnp.sum(r * r, axis=0, keepdims=True)


def _conv2_kernel(y1_ref, sc1_ref, sh1_ref, w2_ref, y2_ref, s2_ref, pad_ref,
                  *, Ho, Wo):
    """Fused bn1(affine)+relu -> 3x3 conv (stride 1) for a block of B images.
    The activated map is written into a zero-padded bf16 VMEM scratch so the 9
    taps are plain static windows feeding the MXU directly.  Emits the raw
    conv2 output (f32) plus (sum, sum_sq) stats."""
    B = pad_ref.shape[0]
    Pp = w2_ref.shape[-1]
    M = B * Ho * Wo
    act = jnp.maximum(
        y1_ref[...].astype(jnp.float32) * sc1_ref[...] + sh1_ref[...], 0.0)
    pad_ref[...] = jnp.zeros(pad_ref.shape, pad_ref.dtype)
    pad_ref[:, 1:Ho + 1, 1:Wo + 1, :] = act.reshape(B, Ho, Wo, Pp).astype(pad_ref.dtype)
    acc = jnp.zeros((M, Pp), jnp.float32)
    for kh in range(3):
        for kw in range(3):
            tap = pad_ref[:, kh:kh + Ho, kw:kw + Wo, :].reshape(M, Pp)
            acc = acc + jnp.dot(tap, w2_ref[kh * 3 + kw],
                                preferred_element_type=jnp.float32)
    y2_ref[...] = acc
    s2_ref[0, 0:1, :] = jnp.sum(acc, axis=0, keepdims=True)
    s2_ref[0, 1:2, :] = jnp.sum(acc * acc, axis=0, keepdims=True)


def _finalize_id_kernel(y2_ref, sc2_ref, sh2_ref, res_ref, o_ref):
    # bn2(affine) + identity residual + relu   (row-tiled, lane-dense stores)
    o_ref[...] = jnp.maximum(
        y2_ref[...] * sc2_ref[...] + sh2_ref[...] + res_ref[...], 0.0)


def _finalize_proj_kernel(y2_ref, sc2_ref, sh2_ref, ysc_ref, scs_ref, shs_ref, o_ref):
    # bn2(affine) + bn_shortcut(affine) residual + relu
    o_ref[...] = jnp.maximum(
        y2_ref[...] * sc2_ref[...] + sh2_ref[...]
        + ysc_ref[...] * scs_ref[...] + shs_ref[...], 0.0)


# ---------------------------------------------------------------------------
# Wrapper helpers
# ---------------------------------------------------------------------------
def _phase_split(x_nhwc, stride):
    """Zero-pad spatially by 1 and split into stride*stride phases so every tap
    of a stride-s 3x3 conv becomes an unstrided shifted window.
    Returns (N, s*s*Hph, Wph, C) with folded row index = phase*Hph + row."""
    N, H, W, C = x_nhwc.shape
    s = stride
    xp = jnp.pad(x_nhwc, ((0, 0), (1, 1), (1, 1), (0, 0)))
    Hp, Wp = H + 2, W + 2
    Hph = -(-Hp // s)
    Wph = -(-Wp // s)
    xp = jnp.pad(xp, ((0, 0), (0, Hph * s - Hp), (0, Wph * s - Wp), (0, 0)))
    xph = xp.reshape(N, Hph, s, Wph, s, C).transpose(0, 2, 4, 1, 3, 5)
    return xph.reshape(N, s * s * Hph, Wph, C), Hph, Wph


def _scale_shift(stats, gamma_p, beta_p, count):
    """Reduce per-block (sum, sum_sq) stats -> per-channel BN scale/shift (f32)."""
    tot = jnp.sum(stats, axis=0)                       # (2, Pp)
    mean = tot[0:1, :] / count
    var = tot[1:2, :] / count - mean * mean            # biased variance
    scale = gamma_p.reshape(1, -1) * jax.lax.rsqrt(var + EPS)
    shift = beta_p.reshape(1, -1) - mean * scale
    return scale, shift


def _imgs_per_block(N, rows_img, min_rows=512, max_rows=4096):
    """Smallest divisor of N giving >=min_rows matmul rows per grid step
    (capped at max_rows), so the MXU stays busy on small feature maps."""
    best = 1
    for b in range(1, N + 1):
        if N % b == 0 and b * rows_img <= max_rows:
            best = b
            if b * rows_img >= min_rows:
                break
    return best


def _row_tile(rows, pp, cap_bytes=2 << 20):
    """Largest row tile (multiple of 8, ~<=2 MiB f32) dividing `rows`."""
    cap = max(64, min(2048, cap_bytes // (4 * pp)))
    cap = max(8, cap - cap % 8)
    if rows <= cap:
        return rows
    for t in range(cap, 7, -1):
        if rows % t == 0 and t % 8 == 0:
            return t
    return rows


def _const_spec(shape):
    zeros = (0,) * len(shape)
    return pl.BlockSpec(shape, lambda n, _z=zeros: _z)


# ---------------------------------------------------------------------------
# BasicBlock forward
# ---------------------------------------------------------------------------
def basic_block_forward(x_nchw, params, stride):
    """BasicBlock forward. x_nchw: (N, Cin, H, W) float32 -> (N, planes, Ho, Wo)."""
    x = jnp.transpose(x_nchw, (0, 2, 3, 1)).astype(jnp.float32)     # NHWC
    N, H, W, Cin = x.shape
    planes = params["w1"].shape[-1]
    s = stride
    Ho = (H - 1) // s + 1
    Wo = (W - 1) // s + 1
    Cp = _round_up(Cin, LANE)
    Pp = _round_up(planes, LANE)
    needs_proj = (s != 1) or (Cin != planes)

    # ---- lane-pad channels; zero-pad weights / gamma / beta consistently ----
    xc = jnp.pad(x, ((0, 0), (0, 0), (0, 0), (0, Cp - Cin)))

    def pad_w(w, ci, co):
        return jnp.pad(w, ((0, 0), (0, 0), (0, ci - w.shape[2]), (0, co - w.shape[3])))

    def pad_v(v):
        return jnp.pad(v, (0, Pp - v.shape[0])).astype(jnp.float32)

    w1 = pad_w(params["w1"], Cp, Pp).reshape(9, Cp, Pp).astype(MXU_DTYPE)
    w2 = pad_w(params["w2"], Pp, Pp).reshape(9, Pp, Pp).astype(MXU_DTYPE)
    g1, b1 = pad_v(params["g1"]), pad_v(params["b1"])
    g2, b2 = pad_v(params["g2"]), pad_v(params["b2"])

    # ---- phase-split padded input (no 9x im2col expansion in HBM) -----------
    xph, Hph, Wph = _phase_split(xc, s)
    xph = xph.astype(MXU_DTYPE)

    rows_img = Ho * Wo
    rows = N * rows_img
    count = float(rows)
    B = _imgs_per_block(N, rows_img)       # images per grid step
    nblk = N // B
    cp = _compiler_params()

    x_spec = pl.BlockSpec((B, s * s * Hph, Wph, Cp), lambda n: (n, 0, 0, 0))
    y_spec = pl.BlockSpec((B * rows_img, Pp), lambda n: (n, 0))
    st_spec = pl.BlockSpec((1, 2, Pp), lambda n: (n, 0, 0))
    vec_const = _const_spec((1, Pp))

    # ---- pass 1: conv1 (+ projection shortcut) raw outputs + stats ----------
    if needs_proj:
        ws = jnp.pad(params["ws"],
                     ((0, 0), (0, 0), (0, Cp - Cin), (0, Pp - planes)))
        ws = ws.reshape(Cp, Pp).astype(MXU_DTYPE)
        gs, bs = pad_v(params["gs"]), pad_v(params["bs"])
        kern_a = functools.partial(_conv1_proj_kernel, s=s, Hph=Hph, Ho=Ho, Wo=Wo)
        y1, s1, ysc, ssc = pl.pallas_call(
            kern_a,
            grid=(nblk,),
            in_specs=[x_spec, _const_spec(w1.shape), _const_spec(ws.shape)],
            out_specs=(y_spec, st_spec, y_spec, st_spec),
            out_shape=(
                jax.ShapeDtypeStruct((rows, Pp), MXU_DTYPE),
                jax.ShapeDtypeStruct((nblk, 2, Pp), jnp.float32),
                jax.ShapeDtypeStruct((rows, Pp), jnp.float32),
                jax.ShapeDtypeStruct((nblk, 2, Pp), jnp.float32),
            ),
            compiler_params=cp,
        )(xph, w1, ws)
    else:
        kern_a = functools.partial(_conv1_kernel, s=s, Hph=Hph, Ho=Ho, Wo=Wo)
        y1, s1 = pl.pallas_call(
            kern_a,
            grid=(nblk,),
            in_specs=[x_spec, _const_spec(w1.shape)],
            out_specs=(y_spec, st_spec),
            out_shape=(
                jax.ShapeDtypeStruct((rows, Pp), MXU_DTYPE),
                jax.ShapeDtypeStruct((nblk, 2, Pp), jnp.float32),
            ),
            compiler_params=cp,
        )(xph, w1)

    sc1, sh1 = _scale_shift(s1, g1, b1, count)          # tiny wrapper reduction

    # ---- pass 2: fused bn1+relu -> conv2 raw output + stats ------------------
    kern_b = functools.partial(_conv2_kernel, Ho=Ho, Wo=Wo)
    y2, s2 = pl.pallas_call(
        kern_b,
        grid=(nblk,),
        in_specs=[y_spec, vec_const, vec_const, _const_spec(w2.shape)],
        out_specs=(y_spec, st_spec),
        out_shape=(
            jax.ShapeDtypeStruct((rows, Pp), jnp.float32),
            jax.ShapeDtypeStruct((nblk, 2, Pp), jnp.float32),
        ),
        scratch_shapes=[pltpu.VMEM((B, Ho + 2, Wo + 2, Pp), MXU_DTYPE)],
        compiler_params=cp,
    )(y1, sc1, sh1, w2)

    sc2, sh2 = _scale_shift(s2, g2, b2, count)

    # ---- pass 3: bn2 + residual + relu, row-tiled, lane-dense stores ---------
    tr = _row_tile(rows, Pp)
    grid_c = (rows // tr,)
    row_spec = pl.BlockSpec((tr, Pp), lambda i: (i, 0))
    vec_spec = pl.BlockSpec((1, Pp), lambda i: (0, 0))
    out_shape_c = jax.ShapeDtypeStruct((rows, Pp), jnp.float32)

    if needs_proj:
        scs, shs = _scale_shift(ssc, gs, bs, count)
        out = pl.pallas_call(
            _finalize_proj_kernel,
            grid=grid_c,
            in_specs=[row_spec, vec_spec, vec_spec, row_spec, vec_spec, vec_spec],
            out_specs=row_spec,
            out_shape=out_shape_c,
            compiler_params=cp,
        )(y2, sc2, sh2, ysc, scs, shs)
    else:
        res = xc.reshape(rows, Pp)        # identity shortcut (Ho=H, Wo=W, Cp=Pp)
        out = pl.pallas_call(
            _finalize_id_kernel,
            grid=grid_c,
            in_specs=[row_spec, vec_spec, vec_spec, row_spec],
            out_specs=row_spec,
            out_shape=out_shape_c,
            compiler_params=cp,
        )(y2, sc2, sh2, res)

    out = out.reshape(N, Ho, Wo, Pp)[:, :, :, :planes]
    return jnp.transpose(out, (0, 3, 1, 2))             # NCHW


# ---------------------------------------------------------------------------
# Pure-JAX reference (for correctness check)
# ---------------------------------------------------------------------------
def _ref_forward(x_nchw, params, stride):
    def conv(x, w, s, pad):
        return jax.lax.conv_general_dilated(
            x, w, window_strides=(s, s), padding=pad,
            dimension_numbers=("NHWC", "HWIO", "NHWC"),
            precision=jax.lax.Precision.HIGHEST)

    def bn(y, g, b):
        mean = jnp.mean(y, axis=(0, 1, 2), keepdims=True)
        var = jnp.mean(jnp.square(y - mean), axis=(0, 1, 2), keepdims=True)
        return (y - mean) * jax.lax.rsqrt(var + EPS) * g + b

    x = jnp.transpose(x_nchw, (0, 2, 3, 1)).astype(jnp.float32)
    planes = params["w1"].shape[-1]
    out = jax.nn.relu(bn(conv(x, params["w1"], stride, [(1, 1), (1, 1)]),
                         params["g1"], params["b1"]))
    out = bn(conv(out, params["w2"], 1, [(1, 1), (1, 1)]), params["g2"], params["b2"])
    if stride != 1 or x.shape[-1] != planes:
        sc = bn(conv(x, params["ws"], stride, [(0, 0), (0, 0)]),
                params["gs"], params["bs"])
    else:
        sc = x
    return jnp.transpose(jax.nn.relu(out + sc), (0, 3, 1, 2))


# ---------------------------------------------------------------------------
# Deterministic parameter init (synthetic, matches module's shapes)
# ---------------------------------------------------------------------------
def make_params(key, in_planes, planes, stride):
    ks = jax.random.split(key, 8)
    params = {
        "w1": 0.1 * jax.random.normal(ks[0], (3, 3, in_planes, planes), jnp.float32),
        "g1": 1.0 + 0.1 * jax.random.normal(ks[1], (planes,), jnp.float32),
        "b1": 0.1 * jax.random.normal(ks[2], (planes,), jnp.float32),
        "w2": 0.1 * jax.random.normal(ks[3], (3, 3, planes, planes), jnp.float32),
        "g2": 1.0 + 0.1 * jax.random.normal(ks[4], (planes,), jnp.float32),
        "b2": 0.1 * jax.random.normal(ks[5], (planes,), jnp.float32),
    }
    if stride != 1 or in_planes != planes:
        params["ws"] = 0.1 * jax.random.normal(ks[6], (1, 1, in_planes, planes), jnp.float32)
        params["gs"] = 1.0 + 0.05 * jax.random.normal(ks[7], (planes,), jnp.float32)
        params["bs"] = 0.05 * jax.random.normal(ks[7], (planes,), jnp.float32)
    return params


if __name__ == "__main__":
    key = jax.random.PRNGKey(0)
    kx, kp1, kp2 = jax.random.split(key, 3)

    # bf16 MXU inputs / bf16-staged conv1 output (f32 accumulation, f32 BN math)
    # -> slightly looser tolerance vs the f32 HIGHEST-precision reference.
    RTOL = ATOL = 2e-2

    # Case 1: projection shortcut (stride=2, channel change): x (2, 4, 16, 16)
    x = jax.random.normal(kx, (2, 4, 16, 16), jnp.float32)
    params = make_params(kp1, in_planes=4, planes=8, stride=2)
    out = jax.block_until_ready(basic_block_forward(x, params, stride=2))
    ref = jax.block_until_ready(_ref_forward(x, params, stride=2))
    assert out.shape == (2, 8, 8, 8)
    np.testing.assert_allclose(np.asarray(out), np.asarray(ref), rtol=RTOL, atol=ATOL)

    # Case 2: identity shortcut (stride=1, same channels): x (2, 8, 16, 16)
    x2 = jax.random.normal(kx, (2, 8, 16, 16), jnp.float32)
    params2 = make_params(kp2, in_planes=8, planes=8, stride=1)
    out2 = jax.block_until_ready(basic_block_forward(x2, params2, stride=1))
    ref2 = jax.block_until_ready(_ref_forward(x2, params2, stride=1))
    assert out2.shape == (2, 8, 16, 16)
    np.testing.assert_allclose(np.asarray(out2), np.asarray(ref2), rtol=RTOL, atol=ATOL)

    print("KERNEL_OK")
</pallas_src>

<mosaic_0001>
module attributes {stable_mosaic.version = 11 : i64} {
  func.func @_conv1_proj_kernel(%arg0: i32, %arg1: memref<2x36x9x128xbf16, #tpu.memory_space<vmem>>, %arg2: memref<9x128x128xbf16, #tpu.memory_space<vmem>>, %arg3: memref<128x128xbf16, #tpu.memory_space<vmem>>, %arg4: memref<128x128xbf16, #tpu.memory_space<vmem>>, %arg5: memref<1x2x128xf32, #tpu.memory_space<vmem>>, %arg6: memref<128x128xf32, #tpu.memory_space<vmem>>, %arg7: memref<1x2x128xf32, #tpu.memory_space<vmem>>) attributes {dimension_semantics = [#tpu.dimension_semantics<parallel>], iteration_bounds = array<i64: 1>, scalar_prefetch = 0 : i64, scratch_operands = 0 : i64, tpu.core_type = #tpu.core_type<tc>, window_params = [{transform_indices = @transform_0, window_bounds = array<i64: 2, 36, 9, 128>}, {pipeline_mode = #tpu.pipeline_mode<synchronous>, transform_indices = @transform_1, window_bounds = array<i64: 9, 128, 128>}, {pipeline_mode = #tpu.pipeline_mode<synchronous>, transform_indices = @transform_2, window_bounds = array<i64: 128, 128>}, {transform_indices = @transform_3, window_bounds = array<i64: 128, 128>}, {transform_indices = @transform_4, window_bounds = array<i64: 1, 2, 128>}, {transform_indices = @transform_5, window_bounds = array<i64: 128, 128>}, {transform_indices = @transform_6, window_bounds = array<i64: 1, 2, 128>}]} {
    %cst = arith.constant 0.000000e+00 : f32
    %0 = vector.broadcast %cst : f32 to vector<128x128xf32>
    %c0 = arith.constant 0 : index
    %c0_0 = arith.constant 0 : index
    %c0_1 = arith.constant 0 : index
    %c0_2 = arith.constant 0 : index
    %1 = vector.load %arg1[%c0, %c0_0, %c0_1, %c0_2] : memref<2x36x9x128xbf16, #tpu.memory_space<vmem>>, vector<2x8x8x128xbf16>
    %2 = vector.shape_cast %1 : vector<2x8x8x128xbf16> to vector<128x128xbf16>
    %c0_3 = arith.constant 0 : index
    %c0_4 = arith.constant 0 : index
    %c0_5 = arith.constant 0 : index
    %3 = vector.load %arg2[%c0_3, %c0_4, %c0_5] : memref<9x128x128xbf16, #tpu.memory_space<vmem>>, vector<1x128x128xbf16>
    %4 = vector.shape_cast %3 : vector<1x128x128xbf16> to vector<128x128xbf16>
    %cst_6 = arith.constant dense<0.000000e+00> : vector<128x128xf32>
    %5 = tpu.matmul %2, %4, %cst_6 {dimension_numbers = #tpu.dot_dimension_numbers<[1], [0], [0], [1], [0, 0, 1, 1], [], []>} : vector<128x128xbf16>, vector<128x128xbf16>, vector<128x128xf32> -> vector<128x128xf32>
    %6 = arith.addf %0, %5 : vector<128x128xf32>
    %c0_7 = arith.constant 0 : index
    %c9 = arith.constant 9 : index
    %c0_8 = arith.constant 0 : index
    %c0_9 = arith.constant 0 : index
    %7 = vector.load %arg1[%c0_7, %c9, %c0_8, %c0_9] : memref<2x36x9x128xbf16, #tpu.memory_space<vmem>>, vector<2x8x8x128xbf16>
    %8 = vector.shape_cast %7 : vector<2x8x8x128xbf16> to vector<128x128xbf16>
    %c1 = arith.constant 1 : index
    %c0_10 = arith.constant 0 : index
    %c0_11 = arith.constant 0 : index
    %9 = vector.load %arg2[%c1, %c0_10, %c0_11] : memref<9x128x128xbf16, #tpu.memory_space<vmem>>, vector<1x128x128xbf16>
    %10 = vector.shape_cast %9 : vector<1x128x128xbf16> to vector<128x128xbf16>
    %cst_12 = arith.constant dense<0.000000e+00> : vector<128x128xf32>
    %11 = tpu.matmul %8, %10, %cst_12 {dimension_numbers = #tpu.dot_dimension_numbers<[1], [0], [0], [1], [0, 0, 1, 1], [], []>} : vector<128x128xbf16>, vector<128x128xbf16>, vector<128x128xf32> -> vector<128x128xf32>
    %12 = arith.addf %6, %11 : vector<128x128xf32>
    %c0_13 = arith.constant 0 : index
    %c0_14 = arith.constant 0 : index
    %c1_15 = arith.constant 1 : index
    %c0_16 = arith.constant 0 : index
    %13 = vector.load %arg1[%c0_13, %c0_14, %c1_15, %c0_16] : memref<2x36x9x128xbf16, #tpu.memory_space<vmem>>, vector<2x8x8x128xbf16>
    %14 = vector.shape_cast %13 : vector<2x8x8x128xbf16> to vector<128x128xbf16>
    %c2 = arith.constant 2 : index
    %c0_17 = arith.constant 0 : index
    %c0_18 = arith.constant 0 : index
    %15 = vector.load %arg2[%c2, %c0_17, %c0_18] : memref<9x128x128xbf16, #tpu.memory_space<vmem>>, vector<1x128x128xbf16>
    %16 = vector.shape_cast %15 : vector<1x128x128xbf16> to vector<128x128xbf16>
    %cst_19 = arith.constant dense<0.000000e+00> : vector<128x128xf32>
    %17 = tpu.matmul %14, %16, %cst_19 {dimension_numbers = #tpu.dot_dimension_numbers<[1], [0], [0], [1], [0, 0, 1, 1], [], []>} : vector<128x128xbf16>, vector<128x128xbf16>, vector<128x128xf32> -> vector<128x128xf32>
    %18 = arith.addf %12, %17 : vector<128x128xf32>
    %c0_20 = arith.constant 0 : index
    %c18 = arith.constant 18 : index
    %c0_21 = arith.constant 0 : index
    %c0_22 = arith.constant 0 : index
    %19 = vector.load %arg1[%c0_20, %c18, %c0_21, %c0_22] : memref<2x36x9x128xbf16, #tpu.memory_space<vmem>>, vector<2x8x8x128xbf16>
    %20 = vector.shape_cast %19 : vector<2x8x8x128xbf16> to vector<128x128xbf16>
    %c3 = arith.constant 3 : index
    %c0_23 = arith.constant 0 : index
    %c0_24 = arith.constant 0 : index
    %21 = vector.load %arg2[%c3, %c0_23, %c0_24] : memref<9x128x128xbf16, #tpu.memory_space<vmem>>, vector<1x128x128xbf16>
    %22 = vector.shape_cast %21 : vector<1x128x128xbf16> to vector<128x128xbf16>
    %cst_25 = arith.constant dense<0.000000e+00> : vector<128x128xf32>
    %23 = tpu.matmul %20, %22, %cst_25 {dimension_numbers = #tpu.dot_dimension_numbers<[1], [0], [0], [1], [0, 0, 1, 1], [], []>} : vector<128x128xbf16>, vector<128x128xbf16>, vector<128x128xf32> -> vector<128x128xf32>
    %24 = arith.addf %18, %23 : vector<128x128xf32>
    %c0_26 = arith.constant 0 : index
    %c27 = arith.constant 27 : index
    %c0_27 = arith.constant 0 : index
    %c0_28 = arith.constant 0 : index
    %25 = vector.load %arg1[%c0_26, %c27, %c0_27, %c0_28] : memref<2x36x9x128xbf16, #tpu.memory_space<vmem>>, vector<2x8x8x128xbf16>
    %26 = vector.shape_cast %25 : vector<2x8x8x128xbf16> to vector<128x128xbf16>
    %c4 = arith.constant 4 : index
    %c0_29 = arith.constant 0 : index
    %c0_30 = arith.constant 0 : index
    %27 = vector.load %arg2[%c4, %c0_29, %c0_30] : memref<9x128x128xbf16, #tpu.memory_space<vmem>>, vector<1x128x128xbf16>
    %28 = vector.shape_cast %27 : vector<1x128x128xbf16> to vector<128x128xbf16>
    %cst_31 = arith.constant dense<0.000000e+00> : vector<128x128xf32>
    %29 = tpu.matmul %26, %28, %cst_31 {dimension_numbers = #tpu.dot_dimension_numbers<[1], [0], [0], [1], [0, 0, 1, 1], [], []>} : vector<128x128xbf16>, vector<128x128xbf16>, vector<128x128xf32> -> vector<128x128xf32>
    %30 = arith.addf %24, %29 : vector<128x128xf32>
    %c0_32 = arith.constant 0 : index
    %c18_33 = arith.constant 18 : index
    %c1_34 = arith.constant 1 : index
    %c0_35 = arith.constant 0 : index
    %31 = vector.load %arg1[%c0_32, %c18_33, %c1_34, %c0_35] : memref<2x36x9x128xbf16, #tpu.memory_space<vmem>>, vector<2x8x8x128xbf16>
    %32 = vector.shape_cast %31 : vector<2x8x8x128xbf16> to vector<128x128xbf16>
    %c5 = arith.constant 5 : index
    %c0_36 = arith.constant 0 : index
    %c0_37 = arith.constant 0 : index
    %33 = vector.load %arg2[%c5, %c0_36, %c0_37] : memref<9x128x128xbf16, #tpu.memory_space<vmem>>, vector<1x128x128xbf16>
    %34 = vector.shape_cast %33 : vector<1x128x128xbf16> to vector<128x128xbf16>
    %cst_38 = arith.constant dense<0.000000e+00> : vector<128x128xf32>
    %35 = tpu.matmul %32, %34, %cst_38 {dimension_numbers = #tpu.dot_dimension_numbers<[1], [0], [0], [1], [0, 0, 1, 1], [], []>} : vector<128x128xbf16>, vector<128x128xbf16>, vector<128x128xf32> -> vector<128x128xf32>
    %36 = arith.addf %30, %35 : vector<128x128xf32>
    %c0_39 = arith.constant 0 : index
    %c1_40 = arith.constant 1 : index
    %c0_41 = arith.constant 0 : index
    %c0_42 = arith.constant 0 : index
    %37 = vector.load %arg1[%c0_39, %c1_40, %c0_41, %c0_42] : memref<2x36x9x128xbf16, #tpu.memory_space<vmem>>, vector<2x8x8x128xbf16>
    %38 = vector.shape_cast %37 : vector<2x8x8x128xbf16> to vector<128x128xbf16>
    %c6 = arith.constant 6 : index
    %c0_43 = arith.constant 0 : index
    %c0_44 = arith.constant 0 : index
    %39 = vector.load %arg2[%c6, %c0_43, %c0_44] : memref<9x128x128xbf16, #tpu.memory_space<vmem>>, vector<1x128x128xbf16>
    %40 = vector.shape_cast %39 : vector<1x128x128xbf16> to vector<128x128xbf16>
    %cst_45 = arith.constant dense<0.000000e+00> : vector<128x128xf32>
    %41 = tpu.matmul %38, %40, %cst_45 {dimension_numbers = #tpu.dot_dimension_numbers<[1], [0], [0], [1], [0, 0, 1, 1], [], []>} : vector<128x128xbf16>, vector<128x128xbf16>, vector<128x128xf32> -> vector<128x128xf32>
    %42 = arith.addf %36, %41 : vector<128x128xf32>
    %c0_46 = arith.constant 0 : index
    %c10 = arith.constant 10 : index
    %c0_47 = arith.constant 0 : index
    %c0_48 = arith.constant 0 : index
    %43 = vector.load %arg1[%c0_46, %c10, %c0_47, %c0_48] : memref<2x36x9x128xbf16, #tpu.memory_space<vmem>>, vector<2x8x8x128xbf16>
    %44 = vector.shape_cast %43 : vector<2x8x8x128xbf16> to vector<128x128xbf16>
    %c7 = arith.constant 7 : index
    %c0_49 = arith.constant 0 : index
    %c0_50 = arith.constant 0 : index
    %45 = vector.load %arg2[%c7, %c0_49, %c0_50] : memref<9x128x128xbf16, #tpu.memory_space<vmem>>, vector<1x128x128xbf16>
    %46 = vector.shape_cast %45 : vector<1x128x128xbf16> to vector<128x128xbf16>
    %cst_51 = arith.constant dense<0.000000e+00> : vector<128x128xf32>
    %47 = tpu.matmul %44, %46, %cst_51 {dimension_numbers = #tpu.dot_dimension_numbers<[1], [0], [0], [1], [0, 0, 1, 1], [], []>} : vector<128x128xbf16>, vector<128x128xbf16>, vector<128x128xf32> -> vector<128x128xf32>
    %48 = arith.addf %42, %47 : vector<128x128xf32>
    %c0_52 = arith.constant 0 : index
    %c1_53 = arith.constant 1 : index
    %c1_54 = arith.constant 1 : index
    %c0_55 = arith.constant 0 : index
    %49 = vector.load %arg1[%c0_52, %c1_53, %c1_54, %c0_55] : memref<2x36x9x128xbf16, #tpu.memory_space<vmem>>, vector<2x8x8x128xbf16>
    %50 = vector.shape_cast %49 : vector<2x8x8x128xbf16> to vector<128x128xbf16>
    %c8 = arith.constant 8 : index
    %c0_56 = arith.constant 0 : index
    %c0_57 = arith.constant 0 : index
    %51 = vector.load %arg2[%c8, %c0_56, %c0_57] : memref<9x128x128xbf16, #tpu.memory_space<vmem>>, vector<1x128x128xbf16>
    %52 = vector.shape_cast %51 : vector<1x128x128xbf16> to vector<128x128xbf16>
    %cst_58 = arith.constant dense<0.000000e+00> : vector<128x128xf32>
    %53 = tpu.matmul %50, %52, %cst_58 {dimension_numbers = #tpu.dot_dimension_numbers<[1], [0], [0], [1], [0, 0, 1, 1], [], []>} : vector<128x128xbf16>, vector<128x128xbf16>, vector<128x128xf32> -> vector<128x128xf32>
    %54 = arith.addf %48, %53 : vector<128x128xf32>
    %55 = arith.truncf %54 : vector<128x128xf32> to vector<128x128xbf16>
    %c0_59 = arith.constant 0 : index
    %c0_60 = arith.constant 0 : index
    %56 = vector.load %arg4[%c0_59, %c0_60] : memref<128x128xbf16, #tpu.memory_space<vmem>>, vector<128x128xbf16>
    tpu.vector_store %arg4[%c0_59, %c0_60], %55 {strides = array<i32>} : memref<128x128xbf16, #tpu.memory_space<vmem>>, vector<128x128xbf16>,
    %cst_61 = arith.constant dense<0.000000e+00> : vector<128xf32>
    %57 = vector.multi_reduction <add>, %54, %cst_61 [0] : vector<128x128xf32> to vector<128xf32>
    %58 = vector.shape_cast %57 : vector<128xf32> to vector<1x128xf32>
    %c0_62 = arith.constant 0 : index
    %c0_63 = arith.constant 0 : index
    %c0_64 = arith.constant 0 : index
    %59 = vector.load %arg5[%c0_62, %c0_63, %c0_64] : memref<1x2x128xf32, #tpu.memory_space<vmem>>, vector<1x1x128xf32>
    %60 = vector.shape_cast %59 : vector<1x1x128xf32> to vector<1x128xf32>
    %61 = vector.shape_cast %58 : vector<1x128xf32> to vector<1x1x128xf32>
    tpu.vector_store %arg5[%c0_62, %c0_63, %c0_64], %61 {strides = array<i32>} : memref<1x2x128xf32, #tpu.memory_space<vmem>>, vector<1x1x128xf32>,
    %62 = arith.mulf %54, %54 : vector<128x128xf32>
    %cst_65 = arith.constant dense<0.000000e+00> : vector<128xf32>
    %63 = vector.multi_reduction <add>, %62, %cst_65 [0] : vector<128x128xf32> to vector<128xf32>
    %64 = vector.shape_cast %63 : vector<128xf32> to vector<1x128xf32>
    %c0_66 = arith.constant 0 : index
    %c1_67 = arith.constant 1 : index
    %c0_68 = arith.constant 0 : index
    %65 = vector.load %arg5[%c0_66, %c1_67, %c0_68] : memref<1x2x128xf32, #tpu.memory_space<vmem>>, vector<1x1x128xf32>
    %66 = vector.shape_cast %65 : vector<1x1x128xf32> to vector<1x128xf32>
    %67 = vector.shape_cast %64 : vector<1x128xf32> to vector<1x1x128xf32>
    tpu.vector_store %arg5[%c0_66, %c1_67, %c0_68], %67 {strides = array<i32>} : memref<1x2x128xf32, #tpu.memory_space<vmem>>, vector<1x1x128xf32>,
    %c0_69 = arith.constant 0 : index
    %c27_70 = arith.constant 27 : index
    %c0_71 = arith.constant 0 : index
    %c0_72 = arith.constant 0 : index
    %68 = vector.load %arg1[%c0_69, %c27_70, %c0_71, %c0_72] : memref<2x36x9x128xbf16, #tpu.memory_space<vmem>>, vector<2x8x8x128xbf16>
    %69 = vector.shape_cast %68 : vector<2x8x8x128xbf16> to vector<128x128xbf16>
    %c0_73 = arith.constant 0 : index
    %c0_74 = arith.constant 0 : index
    %70 = vector.load %arg3[%c0_73, %c0_74] : memref<128x128xbf16, #tpu.memory_space<vmem>>, vector<128x128xbf16>
    %cst_75 = arith.constant dense<0.000000e+00> : vector<128x128xf32>
    %71 = tpu.matmul %69, %70, %cst_75 {dimension_numbers = #tpu.dot_dimension_numbers<[1], [0], [0], [1], [0, 0, 1, 1], [], []>} : vector<128x128xbf16>, vector<128x128xbf16>, vector<128x128xf32> -> vector<128x128xf32>
    %c0_76 = arith.constant 0 : index
    %c0_77 = arith.constant 0 : index
    %72 = vector.load %arg6[%c0_76, %c0_77] : memref<128x128xf32, #tpu.memory_space<vmem>>, vector<128x128xf32>
    tpu.vector_store %arg6[%c0_76, %c0_77], %71 {strides = array<i32>} : memref<128x128xf32, #tpu.memory_space<vmem>>, vector<128x128xf32>,
    %cst_78 = arith.constant dense<0.000000e+00> : vector<128xf32>
    %73 = vector.multi_reduction <add>, %71, %cst_78 [0] : vector<128x128xf32> to vector<128xf32>
    %74 = vector.shape_cast %73 : vector<128xf32> to vector<1x128xf32>
    %c0_79 = arith.constant 0 : index
    %c0_80 = arith.constant 0 : index
    %c0_81 = arith.constant 0 : index
    %75 = vector.load %arg7[%c0_79, %c0_80, %c0_81] : memref<1x2x128xf32, #tpu.memory_space<vmem>>, vector<1x1x128xf32>
    %76 = vector.shape_cast %75 : vector<1x1x128xf32> to vector<1x128xf32>
    %77 = vector.shape_cast %74 : vector<1x128xf32> to vector<1x1x128xf32>
    tpu.vector_store %arg7[%c0_79, %c0_80, %c0_81], %77 {strides = array<i32>} : memref<1x2x128xf32, #tpu.memory_space<vmem>>, vector<1x1x128xf32>,
    %78 = arith.mulf %71, %71 : vector<128x128xf32>
    %cst_82 = arith.constant dense<0.000000e+00> : vector<128xf32>
    %79 = vector.multi_reduction <add>, %78, %cst_82 [0] : vector<128x128xf32> to vector<128xf32>
    %80 = vector.shape_cast %79 : vector<128xf32> to vector<1x128xf32>
    %c0_83 = arith.constant 0 : index
    %c1_84 = arith.constant 1 : index
    %c0_85 = arith.constant 0 : index
    %81 = vector.load %arg7[%c0_83, %c1_84, %c0_85] : memref<1x2x128xf32, #tpu.memory_space<vmem>>, vector<1x1x128xf32>
    %82 = vector.shape_cast %81 : vector<1x1x128xf32> to vector<1x128xf32>
    %83 = vector.shape_cast %80 : vector<1x128xf32> to vector<1x1x128xf32>
    tpu.vector_store %arg7[%c0_83, %c1_84, %c0_85], %83 {strides = array<i32>} : memref<1x2x128xf32, #tpu.memory_space<vmem>>, vector<1x1x128xf32>,
    return
  }
  func.func @transform_0(%arg0: i32) -> (i32, i32, i32, i32) {
    %c0_i32 = arith.constant 0 : i32
    %c0_i32_0 = arith.constant 0 : i32
    %c0_i32_1 = arith.constant 0 : i32
    %c0_i32_2 = arith.constant 0 : i32
    return %arg0, %c0_i32, %c0_i32_0, %c0_i32_1 : i32, i32, i32, i32
  }
  func.func @transform_1(%arg0: i32) -> (i32, i32, i32) {
    %c0_i32 = arith.constant 0 : i32
    %c0_i32_0 = arith.constant 0 : i32
    %c0_i32_1 = arith.constant 0 : i32
    %c0_i32_2 = arith.constant 0 : i32
    return %c0_i32, %c0_i32_0, %c0_i32_1 : i32, i32, i32
  }
  func.func @transform_2(%arg0: i32) -> (i32, i32) {
    %c0_i32 = arith.constant 0 : i32
    %c0_i32_0 = arith.constant 0 : i32
    %c0_i32_1 = arith.constant 0 : i32
    return %c0_i32, %c0_i32_0 : i32, i32
  }
  func.func @transform_3(%arg0: i32) -> (i32, i32) {
    %c0_i32 = arith.constant 0 : i32
    %c0_i32_0 = arith.constant 0 : i32
    return %arg0, %c0_i32 : i32, i32
  }
  func.func @transform_4(%arg0: i32) -> (i32, i32, i32) {
    %c0_i32 = arith.constant 0 : i32
    %c0_i32_0 = arith.constant 0 : i32
    %c0_i32_1 = arith.constant 0 : i32
    return %arg0, %c0_i32, %c0_i32_0 : i32, i32, i32
  }
  func.func @transform_5(%arg0: i32) -> (i32, i32) {
    %c0_i32 = arith.constant 0 : i32
    %c0_i32_0 = arith.constant 0 : i32
    return %arg0, %c0_i32 : i32, i32
  }
  func.func @transform_6(%arg0: i32) -> (i32, i32, i32) {
    %c0_i32 = arith.constant 0 : i32
    %c0_i32_0 = arith.constant 0 : i32
    %c0_i32_1 = arith.constant 0 : i32
    return %arg0, %c0_i32, %c0_i32_0 : i32, i32, i32
  }
}

</mosaic_0001>

<bundles_post_ra>
// kernel: tpu_custom_call.1
= control target key start
LH: loop header
LB: loop body
LE: loop exit
PB: predicated region body
PF: predicated region fallthrough
CT: control target
= control target key end

     0   :  { %12 = vsyncpa [#allocation3], 0  ;;  %s5668_s0 = inlined_call_operand.vmem [shape: bf16[2,36,9,128], index: 0, kind: input, shape index: {}]   ;;  %s5669_s1 = inlined_call_operand.vmem [shape: bf16[9,128,128], index: 1, kind: input, shape index: {}]   ;;  %s5670_s2 = inlined_call_operand.vmem [shape: bf16[128,128], index: 2, kind: input, shape index: {}]   ;;  %s5671_s3 = inlined_call_operand.hbm [shape: bf16[128,128], index: 3, kind: output, shape index: {0}]   ;;  %s5672_s4 = inlined_call_operand.hbm [shape: f32[1,2,128], index: 4, kind: output, shape index: {1}]   ;;  %s5673_s5 = inlined_call_operand.hbm [shape: f32[128,128], index: 5, kind: output, shape index: {2}]   ;;  %s5674_s6 = inlined_call_operand.hbm [shape: f32[1,2,128], index: 6, kind: output, shape index: {3}]  }
   0x1   :  { %13 = vsyncpa [#allocation5], 0  ;;  %v4490_v0 = vld [vmem:[%s5669_s1 + $0x40] sm:$0xff]   ;;  %v4492_v2 = vld [vmem:[%s5669_s1 + $0x48] sm:$0xff]   ;;  %vm506_vm0 = vsmask.f32 3328 }
   0x2   :  { %v4491_v1 = vld [vmem:[%s5669_s1 + $0x100] sm:$0xff]   ;;  %4034 = vmatprep.subr.bf16.mxu1 %v4490_v0  ;;  %v4493_v3 = vld [vmem:[%s5669_s1 + $0x108] sm:$0xff]   ;;  %v4494_v4 = vld [vmem:[%s5669_s1 + $0x50] sm:$0xff]   ;;  %vm507_vm1 = vsmask.f32 7440 }
   0x3   :  { %4162 = vmatprep.subr.bf16.mxu0 %v4491_v1  ;;  %4035 = vmatpush3.bf16.msra.mxu1 %v4490_v0  ;;  %v4495_v5 = vld [vmem:[%s5669_s1 + $0x110] sm:$0xff]   ;;  %v4496_v6 = vld [vmem:[%s5669_s1 + $0x58] sm:$0xff]   ;;  %v4498_v8 = vld [vmem:[%s5669_s1 + $0x60] sm:$0xff]  }
   0x4   :  { %4163 = vmatpush3.bf16.msra.mxu0 %v4491_v1  ;;  %4036 = vmatprep.subr.bf16.mxu1 %v4492_v2  ;;  %v4497_v7 = vld [vmem:[%s5669_s1 + $0x118] sm:$0xff]   ;;  %v4499_v9 = vld [vmem:[%s5669_s1 + $0x120] sm:$0xff]   ;;  %v4500_v10 = vld [vmem:[%s5669_s1 + $0x68] sm:$0xff]  }
   0x5   :  { %4164 = vmatprep.subr.bf16.mxu0 %v4493_v3  ;;  %v4501_v11 = vld [vmem:[%s5669_s1 + $0x128] sm:$0xff]   ;;  %v4507_v13 = vld [vmem:[%s5668_s0 + $0xd8] ss:$8 sps:$4 sm:$0xff]   ;;  %v4502_v14 = vld [vmem:[%s5669_s1 + $0x70] sm:$0xff]  }
   0x6   :  { %v4506_v12 = vld [vmem:[%s5668_s0 + $0x48] ss:$8 sps:$4 sm:$0xff]   ;;  %4178 = vmatprep.mubr.bf16.mxu0 %v4507_v13  ;;  %v4504_v16 = vld [vmem:[%s5669_s1 + $0x78] sm:$0xff]   ;;  %v4509_v19 = vld [vmem:[%s5669_s1] sm:$0xff]  }
   0x7   :  { %4037 = vmatpush3.bf16.msra.mxu1 %v4492_v2  ;;  %4050 = vmatprep.mubr.bf16.mxu1 %v4506_v12  ;;  %v4503_v15 = vld [vmem:[%s5669_s1 + $0x130] sm:$0xff]   ;;  %v4505_v17 = vld [vmem:[%s5669_s1 + $0x138] sm:$0xff]   ;;  %v4511_v20 = vld [vmem:[%s5669_s1 + $0x140] sm:$0xff]  }
   0x8   :  { %4165 = vmatpush3.bf16.msra.mxu0 %v4493_v3  ;;  %4038 = vmatprep.subr.bf16.mxu1 %v4494_v4  ;;  %v4508_v18 = vld [vmem:[%s5668_s0 + $0x58] ss:$8 sps:$4 sm:$0xff]   ;;  %v4510_v21 = vld [vmem:[%s5668_s0 + $0xe8] ss:$8 sps:$4 sm:$0xff]   ;;  %v3540_v43 = vld [vmem:[%s5668_s0 + $0x94] sm:$0x1] }
   0x9   :  { %4166 = vmatprep.subr.bf16.mxu0 %v4495_v5  ;;  %v4512_v22 = vld [vmem:[%s5669_s1 + $0x8] sm:$0xff]   ;;  %v4515_v25 = vld [vmem:[%s5668_s0 + $0xf8] ss:$8 sps:$4 sm:$0xff]   ;;  %v4517_v27 = vld [vmem:[%s5669_s1 + $0x10] sm:$0xff]   ;;  %v1471_v48 = vshll.u32 %v3540_v43, 16 }
   0xa   :  { %v4513_v23 = vld [vmem:[%s5669_s1 + $0x148] sm:$0xff]   ;;  %v4516_v26 = vld [vmem:[%s5668_s0 + $0x78] ss:$8 sps:$4 sm:$0xff]   ;;  %v4519_v28 = vld [vmem:[%s5669_s1 + $0x150] sm:$0xff]  }
   0xb   :  { %4039 = vmatpush3.bf16.msra.mxu1 %v4494_v4  ;;  %v4514_v24 = vld [vmem:[%s5668_s0 + $0x68] ss:$8 sps:$4 sm:$0xff]   ;;  %v4520_v30 = vld [vmem:[%s5669_s1 + $0x18] sm:$0xff]   ;;  %v4525_v35 = vld [vmem:[%s5669_s1 + $0x20] sm:$0xff]   ;;  %v1473_v63 = vrot.slane %v1471_v48, 5 }
   0xc   :  { %4167 = vmatpush3.bf16.msra.mxu0 %v4495_v5  ;;  %4040 = vmatprep.subr.bf16.mxu1 %v4496_v6  ;;  %v4518_v29 = vld [vmem:[%s5668_s0 + $0x108] ss:$8 sps:$4 sm:$0xff]   ;;  %v4521_v31 = vld [vmem:[%s5669_s1 + $0x158] sm:$0xff]   ;;  %v4527_v37 = vld [vmem:[%s5669_s1 + $0x160] sm:$0xff]  }
   0xd   :  { %4168 = vmatprep.subr.bf16.mxu0 %v4497_v7  ;;  %v4522_v32 = vld [vmem:[%s5668_s0 + $0x168] ss:$8 sps:$4 sm:$0xff]   ;;  %v4523_v33 = vld [vmem:[%s5668_s0 + $0x1f8] ss:$8 sps:$4 sm:$0xff]   ;;  %v3542_v47 = vld [vmem:[%s5668_s0 + $0x9c] sm:$0x1] }
   0xe   :  { %v4524_v34 = vld [vmem:[%s5668_s0 + $0x178] ss:$8 sps:$4 sm:$0xff]   ;;  %v4526_v36 = vld [vmem:[%s5668_s0 + $0x208] ss:$8 sps:$4 sm:$0xff]   ;;  %v1485_v55 = vshll.u32 %v3542_v47, 16  ;;  %vm4918_vm2 = vmor %vm506_vm0, %vm507_vm1 }
   0xf   :  { %4041 = vmatpush3.bf16.msra.mxu1 %v4496_v6  ;;  %v4528_v38 = vld [vmem:[%s5669_s1 + $0x28] sm:$0xff]   ;;  %v4531_v41 = vld [vmem:[%s5668_s0 + $0x218] ss:$8 sps:$4 sm:$0xff]   ;;  %v3539_v42 = vld [vmem:[%s5668_s0 + $0x90] sm:$0xf] }
  0x10   :  { %4169 = vmatpush3.bf16.msra.mxu0 %v4497_v7  ;;  %4042 = vmatprep.subr.bf16.mxu1 %v4498_v8  ;;  %v4529_v39 = vld [vmem:[%s5669_s1 + $0x168] sm:$0xff]   ;;  %v3541_v44 = vld [vmem:[%s5668_s0 + $0x98] sm:$0xf]  ;;  %v1462_v45 = vshrl.u32 %v3539_v42, 16  ;;  %v1465_v46 = vshll.u32 %v3539_v42, 16  ;;  %v4533_v52 = vld [vmem:[%s5669_s1 + $0x30] sm:$0xff]  }
  0x11   :  { %4170 = vmatprep.subr.bf16.mxu0 %v4499_v9  ;;  %v4530_v40 = vld [vmem:[%s5668_s0 + $0x188] ss:$8 sps:$4 sm:$0xff]   ;;  %v1476_v49 = vshrl.u32 %v3541_v44, 16  ;;  %v1479_v50 = vshll.u32 %v3541_v44, 16  ;;  %v4532_v51 = vld [vmem:[%s5668_s0 + $0x198] ss:$8 sps:$4 sm:$0xff]  }
  0x12   :  { %v1464_v53 = vrot.slane %v1462_v45, 4  ;;  %v1467_v54 = vrot.slane %v1465_v46, 5  ;;  %v4534_v56 = vld [vmem:[%s5668_s0 + $0x228] ss:$8 sps:$4 sm:$0xff]   ;;  %v4536_v60 = vld [vmem:[%s5669_s1 + $0x38] sm:$0xff]   ;;  %v1487_v0 = vrot.slane %v1485_v55, 5 }
  0x13   :  { %4043 = vmatpush3.bf16.msra.mxu1 %v4498_v8  ;;  %v4535_v57 = vld [vmem:[%s5669_s1 + $0x170] sm:$0xff]   ;;  %v1478_v58 = vrot.slane %v1476_v49, 4  ;;  %v1481_v59 = vrot.slane %v1479_v50, 5  ;;  %v4537_v1 = vld [vmem:[%s5669_s1 + $0x178] sm:$0xff]   ;;  %v4538_v2 = vld [vmem:[%s5668_s0] ss:$8 sps:$4 sm:$0xff]  }
  0x14   :  { %4171 = vmatpush3.bf16.msra.mxu0 %v4499_v9  ;;  %4044 = vmatprep.subr.bf16.mxu1 %v4500_v10  ;;  %v1468_v62 = vor.u32 %v1467_v54, %v1464_v53  ;;  %v3543_v4 = vld [vmem:[%s5668_s0 + $0xa0] sm:$0xf]  ;;  %v3544_v5 = vld [vmem:[%s5668_s0 + $0xa4] sm:$0x1]  ;;  %v3545_v7 = vld [vmem:[%s5668_s0 + $0xa8] sm:$0xf] }
  0x15   :  { %4172 = vmatprep.subr.bf16.mxu0 %v4501_v11  ;;  %v1482_v3 = vor.u32 %v1481_v59, %v1478_v58  ;;  %v3546_v8 = vld [vmem:[%s5668_s0 + $0xac] sm:$0x1]  ;;  %v1490_v9 = vshrl.u32 %v3543_v4, 16  ;;  %v1499_v12 = vshll.u32 %v3544_v5, 16  ;;  %v1504_v13 = vshrl.u32 %v3545_v7, 16 }
  0x16   :  { %v1469_v6 = vrot.slane %v1468_v62, 4  ;;  %v4543_v47 = vld [vmem:[%s5669_s1 + $0x188] sm:$0xff]   ;;  %v3552_v58 = vld [vmem:[%s5668_s0 + $0xc4] sm:$0x1] }
  0x17   :  { %4045 = vmatpush3.bf16.msra.mxu1 %v4500_v10  ;;  %v1483_v10 = vrot.slane %v1482_v3, 4  ;;  %v3553_v59 = vld [vmem:[%s5668_s0 + $0xc8] sm:$0xf]  ;;  %v3554_v62 = vld [vmem:[%s5668_s0 + $0xcc] sm:$0x1] }
  0x18   :  { %4173 = vmatpush3.bf16.msra.mxu0 %v4501_v11  ;;  %4046 = vmatprep.subr.bf16.mxu1 %v4502_v14  ;;  %v1493_v11 = vshll.u32 %v3543_v4, 16  ;;  %v1560_v4 = vshrl.u32 %v3553_v59, 16  ;;  %v1563_v5 = vshll.u32 %v3553_v59, 16 }
  0x19   :  { %4174 = vmatprep.subr.bf16.mxu0 %v4503_v15 }
  0x1b   :  { %4047 = vmatpush3.bf16.msra.mxu1 %v4502_v14  ;;  %v1474_v14 = vsel %vm4918_vm2, %v1469_v6, %v1473_v63  ;;  %v1569_v6 = vshll.u32 %v3554_v62, 16 }
  0x1c   :  { %4175 = vmatpush3.bf16.msra.mxu0 %v4503_v15  ;;  %4048 = vmatprep.subr.bf16.mxu1 %v4504_v16  ;;  %v4540_v15 = vld [vmem:[%s5669_s1 + $0x80] sm:$0xff]  }
  0x1d   :  { %4176 = vmatprep.subr.bf16.mxu0 %v4505_v17 }
  0x1f   :  { %4049 = vmatpush3.bf16.msra.mxu1 %v4504_v16  ;;  %v1492_v16 = vrot.slane %v1490_v9, 4 }
  0x20   :  { %4177 = vmatpush3.bf16.msra.mxu0 %v4505_v17  ;;  %4066 = vmatprep.subr.bf16.mxu1 %v4509_v19  ;;  %v1507_v17 = vshll.u32 %v3545_v7, 16 }
  0x21   :  { %4194 = vmatprep.subr.bf16.mxu0 %v4511_v20 }
  0x22   :  { %4051 = vmatmul.mubr.bf16.vlgmr.msra.gmra.mrb[0].mxu1 %v4508_v18  ;;  %v1513_v18 = vshll.u32 %v3546_v8, 16 }
  0x23   :  { %4179 = vmatmul.mubr.bf16.vlgmr.msra.gmra.mrb[0].mxu0 %v4510_v21  ;;  %4067 = vmatpush3.bf16.msra.mxu1 %v4509_v19  ;;  %v1488_v19 = vsel %vm4918_vm2, %v1483_v10, %v1487_v0  ;;  %v1501_v21 = vrot.slane %v1499_v12, 5  ;;  %v1562_v12 = vrot.slane %v1560_v4, 4 }
  0x24   :  { %4195 = vmatpush3.bf16.msra.mxu0 %v4511_v20  ;;  %4068 = vmatprep.subr.bf16.mxu1 %v4512_v22  ;;  %v1495_v20 = vrot.slane %v1493_v11, 5 }
  0x25   :  { %4196 = vmatprep.subr.bf16.mxu0 %v4513_v23  ;;  %4054 = vmatprep.mubr.bf16.mxu1 %v4514_v24  ;;  %v3587_v24 = vcombine.low %v1474_v14, %v1488_v19  ;;  %v1571_v14 = vrot.slane %v1569_v6, 5 }
  0x26   :  { %4182 = vmatprep.mubr.bf16.mxu0 %v4515_v25  ;;  %v4539_v25 = vld [vmem:[%s5668_s0 + $0x10] ss:$8 sps:$4 sm:$0xff]  }
  0x27   :  { %4069 = vmatpush3.bf16.msra.mxu1 %v4512_v22  ;;  %v1506_v22 = vrot.slane %v1504_v13, 4  ;;  %v1565_v13 = vrot.slane %v1563_v5, 5 }
  0x28   :  { %4197 = vmatpush3.bf16.msra.mxu0 %v4513_v23  ;;  %4070 = vmatprep.subr.bf16.mxu1 %v4517_v27  ;;  %v4541_v23 = vld [vmem:[%s5669_s1 + $0x180] sm:$0xff]  }
  0x29   :  { %4198 = vmatprep.subr.bf16.mxu0 %v4519_v28 }
  0x2a   :  { %4055 = vmatmul.mubr.bf16.gmra.mrb[4].mxu1 %v4516_v26  ;;  %v1509_v26 = vrot.slane %v1507_v17, 5 }
  0x2b   :  { %4183 = vmatmul.mubr.bf16.gmra.mrb[4].mxu0 %v4518_v29  ;;  %4071 = vmatpush3.bf16.msra.mxu1 %v4517_v27  ;;  %v1515_v27 = vrot.slane %v1513_v18, 5  ;;  %v4549_v18 = vld [vmem:[%s5669_s1 + $0x198] sm:$0xff]  }
  0x2c   :  { %4199 = vmatpush3.bf16.msra.mxu0 %v4519_v28  ;;  %4072 = vmatprep.subr.bf16.mxu1 %v4520_v30  ;;  %v1496_v28 = vor.u32 %v1495_v20, %v1492_v16  ;;  %v1510_v29 = vor.u32 %v1509_v26, %v1506_v22  ;;  %v1566_v20 = vor.u32 %v1565_v13, %v1562_v12  ;;  %v4556_v12 = vld [vmem:[%s5668_s0 + $0x140] ss:$8 sps:$4 sm:$0xff]  }
  0x2d   :  { %4200 = vmatprep.subr.bf16.mxu0 %v4521_v31  ;;  %4058 = vmatprep.mubr.bf16.mxu1 %v4522_v32  ;;  %v3547_v32 = vld [vmem:[%s5668_s0 + $0xb0] sm:$0xf] }
  0x2e   :  { %4186 = vmatprep.mubr.bf16.mxu0 %v4523_v33  ;;  %v3548_v33 = vld [vmem:[%s5668_s0 + $0xb4] sm:$0x1]  ;;  %v1567_v26 = vrot.slane %v1566_v20, 4 }
  0x2f   :  { %4073 = vmatpush3.bf16.msra.mxu1 %v4520_v30  ;;  %v4542_v30 = vld [vmem:[%s5669_s1 + $0x88] sm:$0xff]  }
  0x30   :  { %4201 = vmatpush3.bf16.msra.mxu0 %v4521_v31  ;;  %4074 = vmatprep.subr.bf16.mxu1 %v4525_v35  ;;  %v4544_v31 = vld [vmem:[%s5668_s0 + $0x20] ss:$8 sps:$4 sm:$0xff]  }
  0x31   :  { %4202 = vmatprep.subr.bf16.mxu0 %v4527_v37 }
  0x32   :  { %4059 = vmatmul.mubr.bf16.gmra.mrb[8].mxu1 %v4524_v34  ;;  %v1497_v34 = vrot.slane %v1496_v28, 4  ;;  %v3558_v28 = vld [vmem:[%s5668_s0 + $0x1bc] sm:$0x1] }
  0x33   :  { %4187 = vmatmul.mubr.bf16.gmra.mrb[8].mxu0 %v4526_v36  ;;  %4075 = vmatpush3.bf16.msra.mxu1 %v4525_v35  ;;  %v3549_v35 = vld [vmem:[%s5668_s0 + $0xb8] sm:$0xf]  ;;  %v3550_v36 = vld [vmem:[%s5668_s0 + $0xbc] sm:$0x1] }
  0x34   :  { %4203 = vmatpush3.bf16.msra.mxu0 %v4527_v37  ;;  %4076 = vmatprep.subr.bf16.mxu1 %v4528_v38  ;;  %v1518_v37 = vshrl.u32 %v3547_v32, 16  ;;  %v1502_v42 = vsel %vm4918_vm2, %v1497_v34, %v1501_v21  ;;  %v1535_v44 = vshll.u32 %v3549_v35, 16  ;;  %v1541_v45 = vshll.u32 %v3550_v36, 16  ;;  %v4550_v21 = vld [vmem:[%s5668_s0 + $0x120] ss:$8 sps:$4 sm:$0xff]  }
  0x35   :  { %4204 = vmatprep.subr.bf16.mxu0 %v4529_v39  ;;  %4062 = vmatprep.mubr.bf16.mxu1 %v4530_v40  ;;  %v1527_v40 = vshll.u32 %v3548_v33, 16  ;;  %v1572_v34 = vsel %vm4918_vm2, %v1567_v26, %v1571_v14  ;;  %v3563_v14 = vld [vmem:[%s5668_s0 + $0x1d0] sm:$0xf] }
  0x36   :  { %4190 = vmatprep.mubr.bf16.mxu0 %v4531_v41  ;;  %v1532_v41 = vshrl.u32 %v3549_v35, 16  ;;  %v1520_v43 = vrot.slane %v1518_v37, 4  ;;  %v1537_v53 = vrot.slane %v1535_v44, 5  ;;  %v1543_v54 = vrot.slane %v1541_v45, 5  ;;  %v4554_v44 = vld [vmem:[%s5669_s1 + $0xa8] sm:$0xff]  }
  0x37   :  { %4077 = vmatpush3.bf16.msra.mxu1 %v4528_v38  ;;  %v1511_v38 = vrot.slane %v1510_v29, 4  ;;  %v1529_v49 = vrot.slane %v1527_v40, 5  ;;  %v1597_v37 = vshll.u32 %v3558_v28, 16  ;;  %v1630_v20 = vshrl.u32 %v3563_v14, 16 }
  0x38   :  { %4205 = vmatpush3.bf16.msra.mxu0 %v4529_v39  ;;  %4078 = vmatprep.subr.bf16.mxu1 %v4533_v52  ;;  %v1521_v39 = vshll.u32 %v3547_v32, 16  ;;  %v1534_v50 = vrot.slane %v1532_v41, 4 }
  0x39   :  { %4206 = vmatprep.subr.bf16.mxu0 %v4535_v57  ;;  %v1516_v46 = vsel %vm4918_vm2, %v1511_v38, %v1515_v27  ;;  %v3557_v27 = vld [vmem:[%s5668_s0 + $0x1b8] sm:$0xf]  ;;  %v4553_v38 = vld [vmem:[%s5669_s1 + $0x1a0] sm:$0xff]   ;;  %v1632_v26 = vrot.slane %v1630_v20, 4 }
  0x3a   :  { %4063 = vmatmul.mubr.bf16.gmra.mrb[12].mxu1 %v4532_v51  ;;  %v1523_v48 = vrot.slane %v1521_v39, 5  ;;  %v4546_v51 = vld [vmem:[%s5669_s1 + $0x90] sm:$0xff]   ;;  %v1588_v33 = vshrl.u32 %v3557_v27, 16  ;;  %v1591_v36 = vshll.u32 %v3557_v27, 16 }
  0x3b   :  { %4191 = vmatmul.mubr.bf16.gmra.mrb[12].mxu0 %v4534_v56  ;;  %4079 = vmatpush3.bf16.msra.mxu1 %v4533_v52  ;;  %v3588_v52 = vcombine.low %v1502_v42, %v1516_v46  ;;  %v4545_v56 = vld [vmem:[%s5668_s0 + $0x30] ss:$8 sps:$4 sm:$0xff]   ;;  %v1599_v46 = vrot.slane %v1597_v37, 5 }
  0x3c   :  { %4207 = vmatpush3.bf16.msra.mxu0 %v4535_v57  ;;  %4080 = vmatprep.subr.bf16.mxu1 %v4536_v60  ;;  %v1524_v55 = vor.u32 %v1523_v48, %v1520_v43  ;;  %v3551_v57 = vld [vmem:[%s5668_s0 + $0xc0] sm:$0xf]  ;;  %v1590_v42 = vrot.slane %v1588_v33, 4  ;;  %v4551_v43 = vld [vmem:[%s5668_s0 + $0x130] ss:$8 sps:$4 sm:$0xff]   ;;  %v1593_v45 = vrot.slane %v1591_v36, 5 }
  0x3d   :  { %4208 = vmatprep.subr.bf16.mxu0 %v4537_v1  ;;  %4082 = vmatprep.mubr.bf16.mxu1 %v4538_v2  ;;  %v1546_v63 = vshrl.u32 %v3551_v57, 16  ;;  %v1549_v0 = vshll.u32 %v3551_v57, 16  ;;  %v4547_v2 = vld [vmem:[%s5669_s1 + $0x190] sm:$0xff]   ;;  %v3559_v48 = vld [vmem:[%s5668_s0 + $0x1c0] sm:$0xf] }
  0x3e   :  { %4210 = vmatprep.mubr.bf16.mxu0 %v3587_v24  ;;  %v1525_v3 = vrot.slane %v1524_v55, 4  ;;  %v3556_v24 = vld [vmem:[%s5668_s0 + $0x1b4] sm:$0x1]  ;;  %v1605_v55 = vshll.u32 %v3559_v48, 16 }
  0x3f   :  { %4081 = vmatpush3.bf16.msra.mxu1 %v4536_v60  ;;  %v1538_v60 = vor.u32 %v1537_v53, %v1534_v50  ;;  %v1548_v8 = vrot.slane %v1546_v63, 4  ;;  %v1551_v9 = vrot.slane %v1549_v0, 5  ;;  %v1583_v32 = vshll.u32 %v3556_v24, 16  ;;  %v3561_v50 = vld [vmem:[%s5668_s0 + $0x1c8] sm:$0xf]  ;;  %v4558_v57 = vld [vmem:[%s5669_s1 + $0xb0] sm:$0xff]  }
  0x40   :  { %4209 = vmatpush3.bf16.msra.mxu0 %v4537_v1  ;;  %4098 = vmatprep.subr.bf16.mxu1 %v4540_v15  ;;  %v1555_v1 = vshll.u32 %v3552_v58, 16  ;;  %v1530_v11 = vsel %vm4918_vm2, %v1525_v3, %v1529_v49  ;;  %v3560_v49 = vld [vmem:[%s5668_s0 + $0x1c4] sm:$0x1]  ;;  %v3562_v53 = vld [vmem:[%s5668_s0 + $0x1cc] sm:$0x1]  ;;  %v1616_v59 = vshrl.u32 %v3561_v50, 16 }
  0x41   :  { %4226 = vmatprep.subr.bf16.mxu0 %v4541_v23  ;;  %v1539_v7 = vrot.slane %v1538_v60, 4  ;;  %v1552_v17 = vor.u32 %v1551_v9, %v1548_v8  ;;  %v1585_v41 = vrot.slane %v1583_v32, 5  ;;  %v1619_v60 = vshll.u32 %v3561_v50, 16 }
  0x42   :  { %4083 = vmatmul.mubr.bf16.vlgmr.msra.gmra.mrb[0].mxu1 %v4539_v25  ;;  %v1557_v10 = vrot.slane %v1555_v1, 5  ;;  %v4552_v25 = vld [vmem:[%s5669_s1 + $0xa0] sm:$0xff]   ;;  %v1625_v62 = vshll.u32 %v3562_v53, 16  ;;  %v1607_v1 = vrot.slane %v1605_v55, 5  ;;  %v1618_v4 = vrot.slane %v1616_v59, 4 }
  0x43   :  { %4099 = vmatpush3.bf16.msra.mxu1 %v4540_v15  ;;  %4086 = vmatprep.mubr.bf16.mxu1 %v4544_v31  ;;  %v4548_v15 = vld [vmem:[%s5669_s1 + $0x98] sm:$0xff]   ;;  %v1544_v16 = vsel %vm4918_vm2, %v1539_v7, %v1543_v54  ;;  %v1553_v22 = vrot.slane %v1552_v17, 4  ;;  %v1602_v54 = vshrl.u32 %v3559_v48, 16  ;;  %v1621_v5 = vrot.slane %v1619_v60, 5  ;;  %v4559_v7 = vld [vmem:[%s5669_s1 + $0x1b0] sm:$0xff]  }
  0x44   :  { %4100 = vmatprep.subr.bf16.mxu1 %v4542_v30  ;;  %4211 = vmatmul.mubr.bf16.vlgmr.msra.gmra.mrb[0].mxu0 %v3588_v52  ;;  %v3589_v19 = vcombine.low %v1530_v11, %v1544_v16  ;;  %v1594_v52 = vor.u32 %v1593_v45, %v1590_v42  ;;  %v1627_v6 = vrot.slane %v1625_v62, 5  ;;  %v4560_v16 = vld [vmem:[%s5669_s1 + $0xb8] sm:$0xff]  }
  0x45   :  { %4227 = vmatpush3.bf16.msra.mxu0 %v4541_v23  ;;  %v3555_v23 = vld [vmem:[%s5668_s0 + $0x1b0] sm:$0xf]  ;;  %v1604_v0 = vrot.slane %v1602_v54, 4  ;;  %v1622_v11 = vor.u32 %v1621_v5, %v1618_v4  ;;  %v477_v5 = vld [vmem:[%s5668_s0 + $0xc] sm:$0x1] }
  0x46   :  { %4228 = vmatprep.subr.bf16.mxu0 %v4543_v47  ;;  %4214 = vmatprep.mubr.bf16.mxu0 %v3589_v19  ;;  %v1574_v29 = vshrl.u32 %v3555_v23, 16  ;;  %v1577_v31 = vshll.u32 %v3555_v23, 16  ;;  %v1595_v63 = vrot.slane %v1594_v52, 4  ;;  %v3566_v19 = vld [vmem:[%s5668_s0 + $0x1dc] sm:$0x1] }
  0x47   :  { %4101 = vmatpush3.bf16.msra.mxu1 %v4542_v30  ;;  %v1558_v30 = vsel %vm4918_vm2, %v1553_v22, %v1557_v10  ;;  %v1608_v9 = vor.u32 %v1607_v1, %v1604_v0  ;;  %v1623_v17 = vrot.slane %v1622_v11, 4  ;;  %v1633_v22 = vshll.u32 %v3563_v14, 16  ;;  %v474_v1 = vld [vmem:[%s5668_s0] sm:$0xf] }
  0x48   :  { %4102 = vmatprep.subr.bf16.mxu1 %v4546_v51  ;;  %v1576_v35 = vrot.slane %v1574_v29, 4  ;;  %v3590_v39 = vcombine.low %v1558_v30, %v1572_v34  ;;  %v1579_v40 = vrot.slane %v1577_v31, 5  ;;  %v1600_v8 = vsel %vm4918_vm2, %v1595_v63, %v1599_v46  ;;  %v4561_v29 = vld [vmem:[%s5669_s1 + $0x1b8] sm:$0xff]  }
  0x49   :  { %4229 = vmatpush3.bf16.msra.mxu0 %v4543_v47  ;;  %v1609_v13 = vrot.slane %v1608_v9, 4  ;;  %v1653_v28 = vshll.u32 %v3566_v19, 16  ;;  %v1635_v31 = vrot.slane %v1633_v22, 5  ;;  %v4557_v34 = vld [vmem:[%s5668_s0 + $0x150] ss:$8 sps:$4 sm:$0xff]  }
  0x4a   :  { %4087 = vmatmul.mubr.bf16.gmra.mrb[4].mxu1 %v4545_v56  ;;  %4230 = vmatprep.subr.bf16.mxu0 %v4547_v2  ;;  %v1580_v47 = vor.u32 %v1579_v40, %v1576_v35  ;;  %v1611_v56 = vshll.u32 %v3560_v49, 16  ;;  %v5096_v35 = vld [vmem:[%s5669_s1 + $0xc0] sm:$0xff]  }
  0x4b   :  { %4103 = vmatpush3.bf16.msra.mxu1 %v4546_v51  ;;  %4090 = vmatprep.mubr.bf16.mxu1 %v4550_v21  ;;  %v4555_v51 = vld [vmem:[%s5669_s1 + $0x1a8] sm:$0xff]   ;;  %v1655_v37 = vrot.slane %v1653_v28, 5  ;;  %v3568_v40 = vld [vmem:[%s5668_s0 + $0x1e4] sm:$0x1]  ;;  %v481_v28 = vld [vmem:[%s5668_s0 + $0x1c] sm:$0x1] }
  0x4c   :  { %4104 = vmatprep.subr.bf16.mxu1 %v4548_v15  ;;  %4215 = vmatmul.mubr.bf16.gmra.mrb[4].mxu0 %v3590_v39  ;;  %v1581_v58 = vrot.slane %v1580_v47, 4  ;;  %v3567_v39 = vld [vmem:[%s5668_s0 + $0x1e0] sm:$0xf]  ;;  %v1667_v46 = vshll.u32 %v3568_v40, 16 }
  0x4d   :  { %4231 = vmatpush3.bf16.msra.mxu0 %v4547_v2  ;;  %v1613_v2 = vrot.slane %v1611_v56, 5  ;;  %v1661_v45 = vshll.u32 %v3567_v39, 16  ;;  %v5113_v47 = vld [vmem:[%s5669_s1 + $0x1c0] sm:$0xff]  }
  0x4e   :  { %4232 = vmatprep.subr.bf16.mxu0 %v4549_v18  ;;  %v1586_v3 = vsel %vm4918_vm2, %v1581_v58, %v1585_v41  ;;  %v3569_v41 = vld [vmem:[%s5668_s0 + $0x1e8] sm:$0xf]  ;;  %v1669_v55 = vrot.slane %v1667_v46, 5 }
  0x4f   :  { %4105 = vmatpush3.bf16.msra.mxu1 %v4548_v15  ;;  %v3591_v10 = vcombine.low %v1586_v3, %v1600_v8  ;;  %v3564_v15 = vld [vmem:[%s5668_s0 + $0x1d4] sm:$0x1]  ;;  %v1614_v21 = vsel %vm4918_vm2, %v1609_v13, %v1613_v2  ;;  %v1672_v49 = vshrl.u32 %v3569_v41, 16  ;;  %v1675_v50 = vshll.u32 %v3569_v41, 16  ;;  %v475_v2 = vld [vmem:[%s5668_s0 + $0x4] sm:$0x1] }
  0x50   :  { %4106 = vmatprep.subr.bf16.mxu1 %v4552_v25  ;;  %v1639_v23 = vshll.u32 %v3564_v15, 16  ;;  %v1663_v54 = vrot.slane %v1661_v45, 5  ;;  %v476_v3 = vld [vmem:[%s5668_s0 + $0x8] sm:$0xf]  ;;  %v519_v8 = vshll.u32 %v475_v2, 16 }
  0x51   :  { %4233 = vmatpush3.bf16.msra.mxu0 %v4549_v18  ;;  %4218 = vmatprep.mubr.bf16.mxu0 %v3591_v10  ;;  %v3565_v18 = vld [vmem:[%s5668_s0 + $0x1d8] sm:$0xf]  ;;  %v1677_v58 = vrot.slane %v1675_v50, 5  ;;  %v524_v10 = vshrl.u32 %v476_v3, 16  ;;  %v527_v11 = vshll.u32 %v476_v3, 16  ;;  %v4566_v3 = vld [vmem:[%s5669_s1 + $0xc8] sm:$0xff]  }
  0x52   :  { %4091 = vmatmul.mubr.bf16.gmra.mrb[8].mxu1 %v4551_v43  ;;  %4234 = vmatprep.subr.bf16.mxu0 %v4553_v38  ;;  %v1644_v24 = vshrl.u32 %v3565_v18, 16  ;;  %v1647_v27 = vshll.u32 %v3565_v18, 16  ;;  %v1641_v32 = vrot.slane %v1639_v23, 5  ;;  %v3570_v43 = vld [vmem:[%s5668_s0 + $0x1ec] sm:$0x1] }
  0x53   :  { %4107 = vmatpush3.bf16.msra.mxu1 %v4552_v25  ;;  %4094 = vmatprep.mubr.bf16.mxu1 %v4556_v12  ;;  %v1628_v25 = vsel %vm4918_vm2, %v1623_v17, %v1627_v6  ;;  %v510_v6 = vshrl.u32 %v474_v1, 16  ;;  %v533_v12 = vshll.u32 %v477_v5, 16  ;;  %v526_v18 = vrot.slane %v524_v10, 4  ;;  %v4571_v10 = vld [vmem:[%s5669_s1 + $0x1d0] sm:$0xff]  }
  0x54   :  { %4108 = vmatprep.subr.bf16.mxu1 %v4554_v44  ;;  %v3592_v30 = vcombine.low %v1614_v21, %v1628_v25  ;;  %v1646_v33 = vrot.slane %v1644_v24, 4  ;;  %v1649_v36 = vrot.slane %v1647_v27, 5  ;;  %v529_v19 = vrot.slane %v527_v11, 5  ;;  %v4562_v21 = vld [vmem:[%s5668_s0 + $0x8] ss:$8 sps:$4 sm:$0xff]  }
  0x55   :  { %4235 = vmatpush3.bf16.msra.mxu0 %v4553_v38  ;;  %v1636_v38 = vor.u32 %v1635_v31, %v1632_v26  ;;  %v512_v14 = vrot.slane %v510_v6, 4  ;;  %v535_v20 = vrot.slane %v533_v12, 5  ;;  %v478_v24 = vld [vmem:[%s5668_s0 + $0x10] sm:$0xf]  ;;  %v479_v25 = vld [vmem:[%s5668_s0 + $0x14] sm:$0x1] }
  0x56   :  { %4236 = vmatprep.subr.bf16.mxu0 %v4555_v51  ;;  %4219 = vmatmul.mubr.bf16.gmra.mrb[8].mxu0 %v3592_v30  ;;  %v1650_v42 = vor.u32 %v1649_v36, %v1646_v33  ;;  %v480_v26 = vld [vmem:[%s5668_s0 + $0x18] sm:$0xf]  ;;  %v530_v27 = vor.u32 %v529_v19, %v526_v18  ;;  %v541_v30 = vshll.u32 %v478_v24, 16  ;;  %v547_v31 = vshll.u32 %v479_v25, 16  ;;  %v489_v18 = vld [vmem:[%s5668_s0 + $0x3c] sm:$0x1] }
  0x57   :  { %4109 = vmatpush3.bf16.msra.mxu1 %v4554_v44  ;;  %v1658_v44 = vshrl.u32 %v3567_v39, 16  ;;  %v1637_v48 = vrot.slane %v1636_v38, 4  ;;  %v552_v33 = vshrl.u32 %v480_v26, 16  ;;  %v561_v36 = vshll.u32 %v481_v28, 16 }
  0x58   :  { %4110 = vmatprep.subr.bf16.mxu1 %v4558_v57  ;;  %v1651_v52 = vrot.slane %v1650_v42, 4  ;;  %v543_v39 = vrot.slane %v541_v30, 5  ;;  %v549_v40 = vrot.slane %v547_v31, 5  ;;  %v617_v28 = vshll.u32 %v489_v18, 16 }
  0x59   :  { %4237 = vmatpush3.bf16.msra.mxu0 %v4555_v51  ;;  %v1681_v51 = vshll.u32 %v3570_v43, 16  ;;  %v1660_v53 = vrot.slane %v1658_v44, 4  ;;  %v1642_v56 = vsel %vm4918_vm2, %v1637_v48, %v1641_v32  ;;  %v554_v42 = vrot.slane %v552_v33, 4  ;;  %v4564_v48 = vld [vmem:[%s5668_s0 + $0x18] ss:$8 sps:$4 sm:$0xff]  }
  0x5a   :  { %4238 = vmatprep.subr.bf16.mxu0 %v4559_v7  ;;  %4095 = vmatmul.mubr.bf16.gmra.mrb[12].mxu1 %v4557_v34  ;;  %v1656_v60 = vsel %vm4918_vm2, %v1651_v52, %v1655_v37  ;;  %v555_v34 = vshll.u32 %v480_v26, 16  ;;  %v531_v37 = vrot.slane %v530_v27, 4  ;;  %v563_v44 = vrot.slane %v561_v36, 5 }
  0x5b   :  { %4111 = vmatpush3.bf16.msra.mxu1 %v4558_v57  ;;  %v1674_v57 = vrot.slane %v1672_v49, 4  ;;  %v1683_v59 = vrot.slane %v1681_v51, 5  ;;  %v1664_v62 = vor.u32 %v1663_v54, %v1660_v53  ;;  %v3593_v63 = vcombine.low %v1642_v56, %v1656_v60  ;;  %v4567_v53 = vld [vmem:[%s5669_s1 + $0x1c8] sm:$0xff]   ;;  %v482_v54 = vld [vmem:[%s5668_s0 + $0x20] sm:$0xf] }
  0x5c   :  { %4112 = vmatprep.subr.bf16.mxu1 %v4560_v16  ;;  %v557_v43 = vrot.slane %v555_v34, 5  ;;  %v536_v45 = vsel %vm4918_vm2, %v531_v37, %v535_v20  ;;  %v569_v60 = vshll.u32 %v482_v54, 16  ;;  %v619_v37 = vrot.slane %v617_v28, 5 }
  0x5d   :  { %4239 = vmatpush3.bf16.msra.mxu0 %v4559_v7  ;;  %v1678_v0 = vor.u32 %v1677_v58, %v1674_v57  ;;  %v1665_v4 = vrot.slane %v1664_v62, 4  ;;  %v513_v7 = vshll.u32 %v474_v1, 16  ;;  %4222 = vmatprep.mubr.bf16.mxu0 %v3593_v63  ;;  %v484_v57 = vld [vmem:[%s5668_s0 + $0x28] sm:$0xf]  ;;  %v485_v58 = vld [vmem:[%s5668_s0 + $0x2c] sm:$0x1] }
  0x5e   :  { %4240 = vmatprep.subr.bf16.mxu0 %v4561_v29  ;;  %v558_v50 = vor.u32 %v557_v43, %v554_v42  ;;  %v583_v1 = vshll.u32 %v484_v57, 16  ;;  %v571_v5 = vrot.slane %v569_v60, 5  ;;  %v589_v6 = vshll.u32 %v485_v58, 16  ;;  %v4577_v42 = vld [vmem:[%s5669_s1 + $0x1e0] sm:$0xff]  }
  0x5f   :  { %4113 = vmatpush3.bf16.msra.mxu1 %v4560_v16  ;;  %v1679_v9 = vrot.slane %v1678_v0, 4  ;;  %v1670_v13 = vsel %vm4918_vm2, %v1665_v4, %v1669_v55  ;;  %v515_v15 = vrot.slane %v513_v7, 5  ;;  %v521_v16 = vrot.slane %v519_v8, 5  ;;  %v483_v55 = vld [vmem:[%s5668_s0 + $0x24] sm:$0x1] }
  0x60   :  { %4130 = vmatprep.subr.bf16.mxu1 %v5096_v35  ;;  %v559_v52 = vrot.slane %v558_v50, 4  ;;  %v575_v63 = vshll.u32 %v483_v55, 16  ;;  %v580_v0 = vshrl.u32 %v484_v57, 16  ;;  %v585_v8 = vrot.slane %v583_v1, 5  ;;  %v4575_v58 = vld [vmem:[%s5669_s1 + $0xe0] sm:$0xff]  }
  0x61   :  { %4241 = vmatpush3.bf16.msra.mxu0 %v4561_v29  ;;  %v1684_v17 = vsel %vm4918_vm2, %v1679_v9, %v1683_v59  ;;  %v516_v23 = vor.u32 %v515_v15, %v512_v14  ;;  %v538_v29 = vshrl.u32 %v478_v24, 16  ;;  %v566_v59 = vshrl.u32 %v482_v54, 16  ;;  %v4568_v9 = vld [vmem:[%s5668_s0 + $0x28] ss:$8 sps:$4 sm:$0xff]   ;;  %v487_v14 = vld [vmem:[%s5668_s0 + $0x34] sm:$0x1] }
  0x62   :  { %4258 = vmatprep.subr.bf16.mxu0 %v5113_v47  ;;  %v3594_v22 = vcombine.low %v1670_v13, %v1684_v17  ;;  %v564_v62 = vsel %vm4918_vm2, %v559_v52, %v563_v44  ;;  %v582_v7 = vrot.slane %v580_v0, 4  ;;  %v577_v11 = vrot.slane %v575_v63, 5  ;;  %v486_v13 = vld [vmem:[%s5668_s0 + $0x30] sm:$0xf]  ;;  %v488_v17 = vld [vmem:[%s5668_s0 + $0x38] sm:$0xf] }
  0x63   :  { %v517_v32 = vrot.slane %v516_v23, 4  ;;  %v540_v38 = vrot.slane %v538_v29, 4  ;;  %v568_v4 = vrot.slane %v566_v59, 4  ;;  %v591_v12 = vrot.slane %v589_v6, 5  ;;  %v4569_v15 = vld [vmem:[%s5669_s1 + $0xd0] sm:$0xff]   ;;  %v4579_v63 = vld [vmem:[%s5669_s1 + $0x1e8] sm:$0xff]  }
  0x64   :  { %4223 = vmatmul.mubr.bf16.gmra.mrb[12].mxu0 %v3594_v22  ;;  %v594_v19 = vshrl.u32 %v486_v13, 16  ;;  %v597_v20 = vshll.u32 %v486_v13, 16  ;;  %v608_v23 = vshrl.u32 %v488_v17, 16  ;;  %v611_v24 = vshll.u32 %v488_v17, 16  ;;  %v490_v44 = vld [vmem:[%s5668_s0 + $0x120] sm:$0xf] }
  0x65   :  { %4242 = vmatprep.mubr.bf16.mxu0 %v4562_v21  ;;  %v522_v41 = vsel %vm4918_vm2, %v517_v32, %v521_v16  ;;  %v544_v46 = vor.u32 %v543_v39, %v540_v38  ;;  %v586_v16 = vor.u32 %v585_v8, %v582_v7  ;;  %v4573_v21 = vld [vmem:[%s5669_s1 + $0x1d8] sm:$0xff]   ;;  %v625_v52 = vshll.u32 %v490_v44, 16  ;;  %v495_v7 = vld [vmem:[%s5668_s0 + $0x134] sm:$0x1] }
  0x66   :  { %v3427_v49 = vcombine.low %v522_v41, %v536_v45  ;;  %v596_v26 = vrot.slane %v594_v19, 4  ;;  %v599_v27 = vrot.slane %v597_v20, 5  ;;  %v610_v30 = vrot.slane %v608_v23, 4  ;;  %v4572_v32 = vld [vmem:[%s5669_s1 + $0xd8] sm:$0xff]   ;;  %v4583_v13 = vld [vmem:[%s5669_s1 + $0x1f0] sm:$0xff]  }
  0x67   :  { %v545_v51 = vrot.slane %v544_v46, 4  ;;  %v587_v25 = vrot.slane %v586_v16, 4  ;;  %v613_v31 = vrot.slane %v611_v24, 5  ;;  %v4570_v38 = vld [vmem:[%s5668_s0 + $0x38] ss:$8 sps:$4 sm:$0xff]   ;;  %v627_v60 = vrot.slane %v625_v52, 5 }
  0x68   :  { %4114 = vmatprep.mubr.bf16.mxu1 %v3427_v49  ;;  %v600_v34 = vor.u32 %v599_v27, %v596_v26  ;;  %v491_v46 = vld [vmem:[%s5668_s0 + $0x124] sm:$0x1]  ;;  %v493_v49 = vld [vmem:[%s5668_s0 + $0x12c] sm:$0x1]  ;;  %v496_v8 = vld [vmem:[%s5668_s0 + $0x138] sm:$0xf] }
  0x69   :  { %v550_v56 = vsel %vm4918_vm2, %v545_v51, %v549_v40  ;;  %v592_v33 = vsel %vm4918_vm2, %v587_v25, %v591_v12  ;;  %v614_v40 = vor.u32 %v613_v31, %v610_v30  ;;  %v622_v51 = vshrl.u32 %v490_v44, 16  ;;  %v4585_v26 = vld [vmem:[%s5669_s1 + $0x1f8] sm:$0xff]  }
  0x6a   :  { %v3428_v2 = vcombine.low %v550_v56, %v564_v62  ;;  %v601_v41 = vrot.slane %v600_v34, 4  ;;  %v645_v57 = vshll.u32 %v493_v49, 16  ;;  %v4574_v62 = vld [vmem:[%s5668_s0 + $0x128] ss:$8 sps:$4 sm:$0xff]   ;;  %v659_v12 = vshll.u32 %v495_v7, 16  ;;  %v4584_v44 = vld [vmem:[%s5669_s1 + $0xf8] sm:$0xff]  }
  0x6b   :  { %v615_v43 = vrot.slane %v614_v40, 4  ;;  %v624_v59 = vrot.slane %v622_v51, 4  ;;  %v667_v16 = vshll.u32 %v496_v8, 16  ;;  %v501_v40 = vld [vmem:[%s5668_s0 + $0x14c] sm:$0x1] }
  0x6c   :  { %4243 = vmatmul.mubr.bf16.vlgmr.msra.gmra.mrb[0].mxu0 %v4564_v48  ;;  %4115 = vmatmul.mubr.bf16.vlgmr.msra.gmra.mrb[0].mxu1 %v3428_v2  ;;  %v492_v48 = vld [vmem:[%s5668_s0 + $0x128] sm:$0xf]  ;;  %v701_v49 = vshll.u32 %v501_v40, 16  ;;  %v4606_v40 = vld [vmem:[%s5669_s1 + $0x220] sm:$0xff]  }
  0x6d   :  { %4259 = vmatpush3.bf16.msra.mxu0 %v5113_v47  ;;  %v572_v47 = vor.u32 %v571_v5, %v568_v4  ;;  %4131 = vmatpush3.bf16.msra.mxu1 %v5096_v35  ;;  %v603_v35 = vshll.u32 %v487_v14, 16  ;;  %v620_v50 = vsel %vm4918_vm2, %v615_v43, %v619_v37  ;;  %v636_v55 = vshrl.u32 %v492_v48, 16  ;;  %v494_v4 = vld [vmem:[%s5668_s0 + $0x130] sm:$0xf]  ;;  %v4578_v5 = vld [vmem:[%s5669_s1 + $0xe8] sm:$0xff]  }
  0x6e   :  { %4260 = vmatprep.subr.bf16.mxu0 %v4567_v53  ;;  %4246 = vmatprep.mubr.bf16.mxu0 %v4568_v9  ;;  %v639_v56 = vshll.u32 %v492_v48, 16  ;;  %v628_v6 = vor.u32 %v627_v60, %v624_v59  ;;  %v497_v9 = vld [vmem:[%s5668_s0 + $0x13c] sm:$0x1]  ;;  %v669_v24 = vrot.slane %v667_v16, 5  ;;  %v500_v37 = vld [vmem:[%s5668_s0 + $0x148] sm:$0xf] }
  0x6f   :  { %4132 = vmatprep.subr.bf16.mxu1 %v4566_v3  ;;  %v573_v22 = vrot.slane %v572_v47, 4  ;;  %v605_v36 = vrot.slane %v603_v35, 5  ;;  %v638_v1 = vrot.slane %v636_v55, 4  ;;  %v650_v47 = vshrl.u32 %v494_v4, 16  ;;  %v5301_v55 = vld [vmem:[%s5670_s2] sm:$0xff]  }
  0x70   :  { %v641_v2 = vrot.slane %v639_v56, 5  ;;  %v629_v14 = vrot.slane %v628_v6, 4  ;;  %v673_v17 = vshll.u32 %v497_v9, 16  ;;  %v692_v43 = vshrl.u32 %v500_v37, 16  ;;  %v502_v59 = vld [vmem:[%s5668_s0 + $0x150] sm:$0xf] }
  0x71   :  { %4261 = vmatpush3.bf16.msra.mxu0 %v4567_v53  ;;  %v578_v29 = vsel %vm4918_vm2, %v573_v22, %v577_v11  ;;  %4133 = vmatpush3.bf16.msra.mxu1 %v4566_v3  ;;  %v606_v45 = vsel %vm4918_vm2, %v601_v41, %v605_v36  ;;  %v631_v53 = vshll.u32 %v491_v46, 16  ;;  %v647_v3 = vrot.slane %v645_v57, 5  ;;  %v4581_v22 = vld [vmem:[%s5669_s1 + $0xf0] sm:$0xff]   ;;  %v499_v36 = vld [vmem:[%s5668_s0 + $0x144] sm:$0x1] }
  0x72   :  { %4262 = vmatprep.subr.bf16.mxu0 %v4571_v10  ;;  %v3429_v39 = vcombine.low %v578_v29, %v592_v33  ;;  %4134 = vmatprep.subr.bf16.mxu1 %v4569_v15  ;;  %v3430_v54 = vcombine.low %v606_v45, %v620_v50  ;;  %v653_v11 = vshll.u32 %v494_v4, 16  ;;  %v652_v19 = vrot.slane %v650_v47, 4  ;;  %v4576_v29 = vld [vmem:[%s5668_s0 + $0x138] ss:$8 sps:$4 sm:$0xff]  }
  0x73   :  { %v633_v0 = vrot.slane %v631_v53, 5  ;;  %v675_v25 = vrot.slane %v673_v17, 5  ;;  %v498_v33 = vld [vmem:[%s5668_s0 + $0x140] sm:$0xf]  ;;  %v695_v48 = vshll.u32 %v500_v37, 16  ;;  %v703_v57 = vrot.slane %v701_v49, 5 }
  0x74   :  { %4247 = vmatmul.mubr.bf16.gmra.mrb[4].mxu0 %v4570_v38  ;;  %4118 = vmatprep.mubr.bf16.mxu1 %v3429_v39  ;;  %v655_v20 = vrot.slane %v653_v11, 5  ;;  %v678_v38 = vshrl.u32 %v498_v33, 16  ;;  %v681_v41 = vshll.u32 %v498_v33, 16  ;;  %v4590_v50 = vld [vmem:[%s5669_s1 + $0x200] sm:$0xff]   ;;  %v4594_v33 = vld [vmem:[%s5668_s0 + $0xb0] ss:$8 sps:$4 sm:$0xff]  }
  0x75   :  { %4263 = vmatpush3.bf16.msra.mxu0 %v4571_v10  ;;  %4135 = vmatpush3.bf16.msra.mxu1 %v4569_v15  ;;  %v642_v10 = vor.u32 %v641_v2, %v638_v1  ;;  %v664_v15 = vshrl.u32 %v496_v8, 16  ;;  %v634_v35 = vsel %vm4918_vm2, %v629_v14, %v633_v0  ;;  %v697_v56 = vrot.slane %v695_v48, 5  ;;  %v505_v0 = vld [vmem:[%s5668_s0 + $0x15c] sm:$0x1]  ;;  %v4599_v37 = vld [vmem:[%s5670_s2 + $0x10] sm:$0xff]  }
  0x76   :  { %4264 = vmatprep.subr.bf16.mxu0 %v4573_v21  ;;  %4136 = vmatprep.subr.bf16.mxu1 %v4572_v32  ;;  %v656_v28 = vor.u32 %v655_v20, %v652_v19  ;;  %v680_v46 = vrot.slane %v678_v38, 4  ;;  %v683_v52 = vrot.slane %v681_v41, 5  ;;  %v706_v2 = vshrl.u32 %v502_v59, 16  ;;  %v4596_v38 = vld [vmem:[%s5668_s0 + $0xc0] ss:$8 sps:$4 sm:$0xff]   ;;  %v4614_v49 = vld [vmem:[%s5669_s1 + $0x230] sm:$0xff]  }
  0x77   :  { %4119 = vmatmul.mubr.bf16.gmra.mrb[4].mxu1 %v3430_v54  ;;  %4250 = vmatprep.mubr.bf16.mxu0 %v4574_v62  ;;  %v643_v18 = vrot.slane %v642_v10, 4  ;;  %v666_v23 = vrot.slane %v664_v15, 4  ;;  %v694_v54 = vrot.slane %v692_v43, 4  ;;  %v503_v62 = vld [vmem:[%s5668_s0 + $0x154] sm:$0x1]  ;;  %v729_v8 = vshll.u32 %v505_v0, 16 }
  0x78   :  { %v684_v60 = vor.u32 %v683_v52, %v680_v46  ;;  %v715_v4 = vshll.u32 %v503_v62, 16  ;;  %v708_v10 = vrot.slane %v706_v2, 4  ;;  %v4602_v41 = vld [vmem:[%s5668_s0 + $0x1b0] ss:$8 sps:$4 sm:$0xff]   ;;  %v4605_v43 = vld [vmem:[%s5668_s0 + $0x180] ss:$8 sps:$4 sm:$0xff]  }
  0x79   :  { %4265 = vmatpush3.bf16.msra.mxu0 %v4573_v21  ;;  %4137 = vmatpush3.bf16.msra.mxu1 %v4572_v32  ;;  %v661_v21 = vrot.slane %v659_v12, 5  ;;  %v648_v27 = vsel %vm4918_vm2, %v643_v18, %v647_v3  ;;  %v670_v31 = vor.u32 %v669_v24, %v666_v23  ;;  %v657_v32 = vrot.slane %v656_v28, 4  ;;  %v4582_v18 = vld [vmem:[%s5668_s0 + $0x158] ss:$8 sps:$4 sm:$0xff]   ;;  %v4592_v28 = vld [vmem:[%s5669_s1 + $0x208] sm:$0xff]   ;;  %v4615_v62 = vld [vmem:[%s5670_s2 + $0x30] sm:$0xff]  }
  0x7a   :  { %4266 = vmatprep.subr.bf16.mxu0 %v4577_v42  ;;  %4138 = vmatprep.subr.bf16.mxu1 %v4575_v58  ;;  %v3431_v30 = vcombine.low %v634_v35, %v648_v27  ;;  %v698_v1 = vor.u32 %v697_v56, %v694_v54  ;;  %v709_v3 = vshll.u32 %v502_v59, 16  ;;  %v717_v11 = vrot.slane %v715_v4, 5  ;;  %v4587_v23 = vld [vmem:[%s5668_s0 + $0x50] ss:$8 sps:$4 sm:$0xff]   ;;  %v4589_v27 = vld [vmem:[%s5668_s0 + $0x60] ss:$8 sps:$4 sm:$0xff]  }
  0x7b   :  { %v671_v34 = vrot.slane %v670_v31, 4  ;;  %v662_v39 = vsel %vm4918_vm2, %v657_v32, %v661_v21  ;;  %v731_v15 = vrot.slane %v729_v8, 5  ;;  %v4595_v31 = vld [vmem:[%s5668_s0 + $0x70] ss:$8 sps:$4 sm:$0xff]   ;;  %v4593_v32 = vld [vmem:[%s5670_s2 + $0x8] sm:$0xff]   ;;  %v4607_v46 = vld [vmem:[%s5670_s2 + $0x20] sm:$0xff]  }
  0x7c   :  { %4251 = vmatmul.mubr.bf16.gmra.mrb[8].mxu0 %v4576_v29  ;;  %4122 = vmatprep.mubr.bf16.mxu1 %v3431_v30  ;;  %v699_v9 = vrot.slane %v698_v1, 4  ;;  %v711_v47 = vrot.slane %v709_v3, 5  ;;  %v4588_v29 = vld [vmem:[%s5668_s0 + $0xa0] ss:$8 sps:$4 sm:$0xff]   ;;  %v4598_v30 = vld [vmem:[%s5669_s1 + $0x210] sm:$0xff]  }
  0x7d   :  { %4267 = vmatpush3.bf16.msra.mxu0 %v4577_v42  ;;  %4139 = vmatpush3.bf16.msra.mxu1 %v4575_v58  ;;  %v687_v42 = vshll.u32 %v499_v36, 16  ;;  %v676_v45 = vsel %vm4918_vm2, %v671_v34, %v675_v25  ;;  %v4580_v58 = vld [vmem:[%s5668_s0 + $0x148] ss:$8 sps:$4 sm:$0xff]   ;;  %v4600_v36 = vld [vmem:[%s5669_s1 + $0x218] sm:$0xff]   ;;  %v3700_v54 = vld [vmem:[%s5668_s0 + $0xc] sm:$0x1] }
  0x7e   :  { %4268 = vmatprep.subr.bf16.mxu0 %v4579_v63  ;;  %4140 = vmatprep.subr.bf16.mxu1 %v4578_v5  ;;  %v3432_v51 = vcombine.low %v662_v39, %v676_v45  ;;  %v704_v16 = vsel %vm4918_vm2, %v699_v9, %v703_v57  ;;  %v712_v17 = vor.u32 %v711_v47, %v708_v10  ;;  %v4586_v25 = vld [vmem:[%s5668_s0 + $0x90] ss:$8 sps:$4 sm:$0xff]   ;;  %v4597_v34 = vld [vmem:[%s5668_s0 + $0x80] ss:$8 sps:$4 sm:$0xff]   ;;  %v3702_v56 = vld [vmem:[%s5668_s0 + $0x14] sm:$0x1] }
  0x7f   :  { %v689_v53 = vrot.slane %v687_v42, 5  ;;  %4254 = vmatprep.mubr.bf16.mxu0 %v4580_v58  ;;  %v4603_v39 = vld [vmem:[%s5668_s0 + $0x170] ss:$8 sps:$4 sm:$0xff]   ;;  %v4604_v48 = vld [vmem:[%s5668_s0 + $0x1c0] ss:$8 sps:$4 sm:$0xff]   ;;  %v2423_v59 = vshll.u32 %v3700_v54, 16 }
  0x80   :  { %4123 = vmatmul.mubr.bf16.gmra.mrb[8].mxu1 %v3432_v51  ;;  %v713_v21 = vrot.slane %v712_v17, 4  ;;  %v4601_v42 = vld [vmem:[%s5670_s2 + $0x18] sm:$0xff]   ;;  %v4609_v51 = vld [vmem:[%s5670_s2 + $0x28] sm:$0xff]   ;;  %v2437_v1 = vshll.u32 %v3702_v56, 16  ;;  %v3705_v47 = vld [vmem:[%s5668_s0 + $0x20] sm:$0xf] }
  0x81   :  { %4269 = vmatpush3.bf16.msra.mxu0 %v4579_v63  ;;  %4141 = vmatpush3.bf16.msra.mxu1 %v4578_v5  ;;  %v504_v63 = vld [vmem:[%s5668_s0 + $0x158] sm:$0xf]  ;;  %v685_v5 = vrot.slane %v684_v60, 4  ;;  %v4613_v52 = vld [vmem:[%s5668_s0 + $0x1a0] ss:$8 sps:$4 sm:$0xff]   ;;  %v2425_v4 = vrot.slane %v2423_v59, 5 }
  0x82   :  { %4270 = vmatprep.subr.bf16.mxu0 %v4583_v13  ;;  %4142 = vmatprep.subr.bf16.mxu1 %v4581_v22  ;;  %v720_v6 = vshrl.u32 %v504_v63, 16  ;;  %v723_v7 = vshll.u32 %v504_v63, 16  ;;  %v718_v35 = vsel %vm4918_vm2, %v713_v21, %v717_v11  ;;  %v4611_v45 = vld [vmem:[%s5668_s0 + $0x190] ss:$8 sps:$4 sm:$0xff]   ;;  %v2439_v9 = vrot.slane %v2437_v1, 5 }
  0x83   :  { %v690_v12 = vsel %vm4918_vm2, %v685_v5, %v689_v53  ;;  %v3699_v53 = vld [vmem:[%s5668_s0 + $0x8] sm:$0xf]  ;;  %v4616_v63 = vld [vmem:[%s5669_s1 + $0x238] sm:$0xff]   ;;  %v3714_v1 = vld [vmem:[%s5668_s0 + $0x44] sm:$0x1] }
  0x84   :  { %v725_v14 = vrot.slane %v723_v7, 5  ;;  %v3433_v19 = vcombine.low %v690_v12, %v704_v16  ;;  %4255 = vmatmul.mubr.bf16.gmra.mrb[12].mxu0 %v4582_v18  ;;  %v2414_v57 = vshrl.u32 %v3699_v53, 16  ;;  %v2417_v58 = vshll.u32 %v3699_v53, 16  ;;  %v4612_v7 = vld [vmem:[%s5668_s0 + $0x1e0] ss:$8 sps:$4 sm:$0xff]  }
  0x85   :  { %4271 = vmatpush3.bf16.msra.mxu0 %v4583_v13  ;;  %4143 = vmatpush3.bf16.msra.mxu1 %v4581_v22  ;;  %v722_v13 = vrot.slane %v720_v6, 4  ;;  %v3703_v6 = vld [vmem:[%s5668_s0 + $0x18] sm:$0xf]  ;;  %v3704_v10 = vld [vmem:[%s5668_s0 + $0x1c] sm:$0x1]  ;;  %v2456_v18 = vshrl.u32 %v3705_v47, 16 }
  0x86   :  { %4272 = vmatprep.subr.bf16.mxu0 %v4585_v26  ;;  %4144 = vmatprep.subr.bf16.mxu1 %v4584_v44  ;;  %v2416_v2 = vrot.slane %v2414_v57, 4  ;;  %v2419_v3 = vrot.slane %v2417_v58, 5  ;;  %v4618_v12 = vld [vmem:[%s5668_s0 + $0xd8] ss:$8 sps:$4 sm:$0xff]   ;;  %v2451_v16 = vshll.u32 %v3704_v10, 16  ;;  %v2521_v10 = vshll.u32 %v3714_v1, 16 }
  0x87   :  { %v726_v20 = vor.u32 %v725_v14, %v722_v13  ;;  %4126 = vmatprep.mubr.bf16.mxu1 %v3433_v19  ;;  %4274 = vmatprep.mubr.bf16.mxu0 %v4587_v23  ;;  %v3706_v13 = vld [vmem:[%s5668_s0 + $0x24] sm:$0x1]  ;;  %v2442_v14 = vshrl.u32 %v3703_v6, 16  ;;  %v2459_v19 = vshll.u32 %v3705_v47, 16  ;;  %v4620_v54 = vld [vmem:[%s5668_s0 + $0xf8] ss:$8 sps:$4 sm:$0xff]  }
  0x88   :  { %v2420_v11 = vor.u32 %v2419_v3, %v2416_v2  ;;  %v2453_v23 = vrot.slane %v2451_v16, 5  ;;  %v3712_v59 = vld [vmem:[%s5668_s0 + $0x3c] sm:$0x1]  ;;  %v3724_v1 = vld [vmem:[%s5668_s0 + $0x14c] sm:$0x1] }
  0x89   :  { %4273 = vmatpush3.bf16.msra.mxu0 %v4585_v26  ;;  %4145 = vmatpush3.bf16.msra.mxu1 %v4584_v44  ;;  %v727_v22 = vrot.slane %v726_v20, 4  ;;  %v4608_v44 = vld [vmem:[%s5669_s1 + $0x228] sm:$0xff]   ;;  %v2465_v20 = vshll.u32 %v3706_v13, 16  ;;  %v2507_v3 = vshll.u32 %v3712_v59, 16 }
  0x8a   :  { %4290 = vmatprep.subr.bf16.mxu0 %v4590_v50  ;;  %4322 = vmatprep.subr.bf16.mxu1 %v5301_v55  ;;  %v2421_v21 = vrot.slane %v2420_v11, 4 }
  0x8b   :  { %v732_v24 = vsel %vm4918_vm2, %v727_v22, %v731_v15  ;;  %v2445_v15 = vshll.u32 %v3703_v6, 16  ;;  %v2444_v22 = vrot.slane %v2442_v14, 4  ;;  %v3715_v14 = vld [vmem:[%s5668_s0 + $0x128] sm:$0xf] }
  0x8c   :  { %v3434_v26 = vcombine.low %v718_v35, %v732_v24  ;;  %4275 = vmatmul.mubr.bf16.vlgmr.msra.gmra.mrb[0].mxu0 %v4589_v27  ;;  %v4617_v24 = vld [vmem:[%s5670_s2 + $0x38] sm:$0xff]   ;;  %v2461_v27 = vrot.slane %v2459_v19, 5  ;;  %v3717_v19 = vld [vmem:[%s5668_s0 + $0x130] sm:$0xf] }
  0x8d   :  { %4291 = vmatpush3.bf16.msra.mxu0 %v4590_v50  ;;  %4278 = vmatprep.mubr.bf16.mxu0 %v4595_v31  ;;  %v4610_v50 = vld [vmem:[%s5668_s0 + $0x1d0] ss:$8 sps:$4 sm:$0xff]   ;;  %v2447_v35 = vrot.slane %v2445_v15, 5  ;;  %v3707_v31 = vld [vmem:[%s5668_s0 + $0x28] sm:$0xf] }
  0x8e   :  { %4127 = vmatmul.mubr.bf16.gmra.mrb[12].mxu1 %v3434_v26  ;;  %4292 = vmatprep.subr.bf16.mxu0 %v4592_v28  ;;  %v2458_v26 = vrot.slane %v2456_v18, 4  ;;  %v3716_v18 = vld [vmem:[%s5668_s0 + $0x12c] sm:$0x1] }
  0x8f   :  { %4146 = vmatprep.mubr.bf16.mxu1 %v4586_v25 }
  0x91   :  { %4293 = vmatpush3.bf16.msra.mxu0 %v4592_v28  ;;  %v2467_v28 = vrot.slane %v2465_v20, 5 }
  0x92   :  { %4294 = vmatprep.subr.bf16.mxu0 %v4598_v30 }
  0x94   :  { %4279 = vmatmul.mubr.bf16.gmra.mrb[4].mxu0 %v4597_v34 }
  0x95   :  { %4295 = vmatpush3.bf16.msra.mxu0 %v4598_v30  ;;  %4282 = vmatprep.mubr.bf16.mxu0 %v4603_v39  ;;  %v2448_v30 = vor.u32 %v2447_v35, %v2444_v22  ;;  %v2473_v39 = vshll.u32 %v3707_v31, 16  ;;  %v3718_v22 = vld [vmem:[%s5668_s0 + $0x134] sm:$0x1]  ;;  %v2526_v35 = vshrl.u32 %v3715_v14, 16 }
  0x96   :  { %4147 = vmatmul.mubr.bf16.vlgmr.msra.gmra.mrb[0].mxu1 %v4588_v29  ;;  %4296 = vmatprep.subr.bf16.mxu0 %v4600_v36  ;;  %v2426_v29 = vsel %vm4918_vm2, %v2421_v21, %v2425_v4  ;;  %v4621_v21 = vld [vmem:[%s5668_s0 + $0x108] ss:$8 sps:$4 sm:$0xff]  }
  0x97   :  { %4323 = vmatpush3.bf16.msra.mxu1 %v5301_v55  ;;  %4150 = vmatprep.mubr.bf16.mxu1 %v4594_v33  ;;  %v3701_v55 = vld [vmem:[%s5668_s0 + $0x10] sm:$0xf] }
  0x98   :  { %4324 = vmatprep.subr.bf16.mxu1 %v4593_v32  ;;  %v2428_v60 = vshrl.u32 %v3701_v55, 16  ;;  %v2431_v0 = vshll.u32 %v3701_v55, 16  ;;  %v3709_v33 = vld [vmem:[%s5668_s0 + $0x30] sm:$0xf]  ;;  %v3711_v55 = vld [vmem:[%s5668_s0 + $0x38] sm:$0xf] }
  0x99   :  { %4297 = vmatpush3.bf16.msra.mxu0 %v4600_v36  ;;  %v2462_v36 = vor.u32 %v2461_v27, %v2458_v26  ;;  %v2501_v2 = vshll.u32 %v3711_v55, 16 }
  0x9a   :  { %4298 = vmatprep.subr.bf16.mxu0 %v4606_v40  ;;  %v2430_v5 = vrot.slane %v2428_v60, 4  ;;  %v2433_v8 = vrot.slane %v2431_v0, 5  ;;  %v3713_v60 = vld [vmem:[%s5668_s0 + $0x40] sm:$0xf] }
  0x9b   :  { %4325 = vmatpush3.bf16.msra.mxu1 %v4593_v32  ;;  %v3708_v32 = vld [vmem:[%s5668_s0 + $0x2c] sm:$0x1] }
  0x9c   :  { %4326 = vmatprep.subr.bf16.mxu1 %v4599_v37  ;;  %4283 = vmatmul.mubr.bf16.gmra.mrb[8].mxu0 %v4605_v43  ;;  %v2434_v17 = vor.u32 %v2433_v8, %v2430_v5  ;;  %v2484_v43 = vshrl.u32 %v3709_v33, 16  ;;  %v2503_v8 = vrot.slane %v2501_v2, 5 }
  0x9d   :  { %4299 = vmatpush3.bf16.msra.mxu0 %v4606_v40  ;;  %4286 = vmatprep.mubr.bf16.mxu0 %v4611_v45  ;;  %v4619_v45 = vld [vmem:[%s5668_s0 + $0xe8] ss:$8 sps:$4 sm:$0xff]  }
  0x9e   :  { %4151 = vmatmul.mubr.bf16.gmra.mrb[4].mxu1 %v4596_v38  ;;  %4300 = vmatprep.subr.bf16.mxu0 %v4608_v44  ;;  %v2435_v25 = vrot.slane %v2434_v17, 4  ;;  %v2470_v38 = vshrl.u32 %v3707_v31, 16  ;;  %v2523_v17 = vrot.slane %v2521_v10, 5 }
  0x9f   :  { %4327 = vmatpush3.bf16.msra.mxu1 %v4599_v37  ;;  %4154 = vmatprep.mubr.bf16.mxu1 %v4602_v41  ;;  %v3710_v37 = vld [vmem:[%s5668_s0 + $0x34] sm:$0x1]  ;;  %v2449_v41 = vrot.slane %v2448_v30, 4 }
  0xa0   :  { %4328 = vmatprep.subr.bf16.mxu1 %v4601_v42  ;;  %v2440_v34 = vsel %vm4918_vm2, %v2435_v25, %v2439_v9  ;;  %v2493_v53 = vshll.u32 %v3710_v37, 16  ;;  %v2515_v9 = vshll.u32 %v3713_v60, 16 }
  0xa1   :  { %4301 = vmatpush3.bf16.msra.mxu0 %v4608_v44  ;;  %v3747_v40 = vcombine.low %v2426_v29, %v2440_v34  ;;  %v2463_v44 = vrot.slane %v2462_v36, 4  ;;  %v2528_v29 = vrot.slane %v2526_v35, 4 }
  0xa2   :  { %4302 = vmatprep.subr.bf16.mxu0 %v4614_v49  ;;  %v2495_v0 = vrot.slane %v2493_v53, 5  ;;  %v2517_v16 = vrot.slane %v2515_v9, 5 }
  0xa3   :  { %4329 = vmatpush3.bf16.msra.mxu1 %v4601_v42  ;;  %v2479_v42 = vshll.u32 %v3708_v32, 16  ;;  %v2468_v56 = vsel %vm4918_vm2, %v2463_v44, %v2467_v28  ;;  %v2540_v28 = vshrl.u32 %v3717_v19, 16  ;;  %v2543_v32 = vshll.u32 %v3717_v19, 16  ;;  %v3727_v19 = vld [vmem:[%s5668_s0 + $0x158] sm:$0xf] }
  0xa4   :  { %4330 = vmatprep.subr.bf16.mxu1 %v4607_v46  ;;  %4287 = vmatmul.mubr.bf16.gmra.mrb[12].mxu0 %v4613_v52  ;;  %v2486_v52 = vrot.slane %v2484_v43, 4  ;;  %v3721_v43 = vld [vmem:[%s5668_s0 + $0x140] sm:$0xf] }
  0xa5   :  { %4303 = vmatpush3.bf16.msra.mxu0 %v4614_v49  ;;  %v2487_v49 = vshll.u32 %v3709_v33, 16  ;;  %4306 = vmatprep.mubr.bf16.mxu0 %v3747_v40  ;;  %v4622_v33 = vld [vmem:[%s5668_s0 + $0x1f8] ss:$8 sps:$4 sm:$0xff]   ;;  %v2542_v37 = vrot.slane %v2540_v28, 4  ;;  %v3730_v28 = vld [vmem:[%s5668_s0 + $0x164] sm:$0x1] }
  0xa6   :  { %4155 = vmatmul.mubr.bf16.gmra.mrb[8].mxu1 %v4604_v48  ;;  %4304 = vmatprep.subr.bf16.mxu0 %v4616_v63  ;;  %v2475_v48 = vrot.slane %v2473_v39, 5  ;;  %v3719_v39 = vld [vmem:[%s5668_s0 + $0x138] sm:$0xf] }
  0xa7   :  { %4331 = vmatpush3.bf16.msra.mxu1 %v4607_v46  ;;  %4158 = vmatprep.mubr.bf16.mxu1 %v4610_v50  ;;  %v2472_v46 = vrot.slane %v2470_v38, 4  ;;  %v2454_v50 = vsel %vm4918_vm2, %v2449_v41, %v2453_v23  ;;  %v2489_v58 = vrot.slane %v2487_v49, 5  ;;  %v2529_v23 = vshll.u32 %v3715_v14, 16  ;;  %v4624_v14 = vld [vmem:[%s5668_s0 + $0x218] ss:$8 sps:$4 sm:$0xff]  }
  0xa8   :  { %4332 = vmatprep.subr.bf16.mxu1 %v4609_v51  ;;  %v2549_v38 = vshll.u32 %v3718_v22, 16  ;;  %v2545_v41 = vrot.slane %v2543_v32, 5  ;;  %v2554_v44 = vshrl.u32 %v3719_v39, 16  ;;  %v2557_v49 = vshll.u32 %v3719_v39, 16 }
  0xa9   :  { %4305 = vmatpush3.bf16.msra.mxu0 %v4616_v63  ;;  %v2476_v57 = vor.u32 %v2475_v48, %v2472_v46  ;;  %v3748_v63 = vcombine.low %v2454_v50, %v2468_v56  ;;  %v2490_v5 = vor.u32 %v2489_v58, %v2486_v52  ;;  %v2531_v30 = vrot.slane %v2529_v23, 5  ;;  %v3722_v48 = vld [vmem:[%s5668_s0 + $0x144] sm:$0x1]  ;;  %v3728_v23 = vld [vmem:[%s5668_s0 + $0x15c] sm:$0x1] }
  0xaa   :  { %v2551_v46 = vrot.slane %v2549_v38, 5  ;;  %v2546_v53 = vor.u32 %v2545_v41, %v2542_v37  ;;  %v2571_v58 = vshll.u32 %v3721_v43, 16  ;;  %v2613_v32 = vshll.u32 %v3727_v19, 16 }
  0xab   :  { %4333 = vmatpush3.bf16.msra.mxu1 %v4609_v51  ;;  %v2481_v51 = vrot.slane %v2479_v42, 5  ;;  %v2477_v4 = vrot.slane %v2476_v57, 4  ;;  %v2491_v11 = vrot.slane %v2490_v5, 4  ;;  %v2532_v40 = vor.u32 %v2531_v30, %v2528_v29  ;;  %v3720_v42 = vld [vmem:[%s5668_s0 + $0x13c] sm:$0x1] }
  0xac   :  { %4334 = vmatprep.subr.bf16.mxu1 %v4615_v62  ;;  %4307 = vmatmul.mubr.bf16.vlgmr.msra.gmra.mrb[0].mxu0 %v3748_v63  ;;  %v2563_v50 = vshll.u32 %v3720_v42, 16  ;;  %v2568_v57 = vshrl.u32 %v3721_v43, 16  ;;  %v4623_v63 = vld [vmem:[%s5668_s0 + $0x208] ss:$8 sps:$4 sm:$0xff]   ;;  %v2619_v37 = vshll.u32 %v3728_v23, 16  ;;  %v2615_v39 = vrot.slane %v2613_v32, 5 }
  0xad   :  { %v2482_v47 = vsel %vm4918_vm2, %v2477_v4, %v2481_v51  ;;  %v2496_v20 = vsel %vm4918_vm2, %v2491_v11, %v2495_v0  ;;  %v2533_v52 = vrot.slane %v2532_v40, 4  ;;  %v3723_v0 = vld [vmem:[%s5668_s0 + $0x148] sm:$0xf]  ;;  %v2573_v4 = vrot.slane %v2571_v58, 5  ;;  %v3725_v5 = vld [vmem:[%s5668_s0 + $0x150] sm:$0xf] }
  0xae   :  { %4159 = vmatmul.mubr.bf16.gmra.mrb[12].mxu1 %v4612_v7  ;;  %v2512_v7 = vshrl.u32 %v3713_v60, 16  ;;  %v3749_v25 = vcombine.low %v2482_v47, %v2496_v20  ;;  %v2565_v56 = vrot.slane %v2563_v50, 5  ;;  %v2547_v60 = vrot.slane %v2546_v53, 4 }
  0xaf   :  { %4335 = vmatpush3.bf16.msra.mxu1 %v4615_v62  ;;  %4338 = vmatprep.mubr.bf16.mxu1 %v4618_v12  ;;  %v2498_v62 = vshrl.u32 %v3711_v55, 16  ;;  %v2509_v12 = vrot.slane %v2507_v3, 5  ;;  %v2559_v55 = vrot.slane %v2557_v49, 5  ;;  %v2570_v3 = vrot.slane %v2568_v57, 4 }
  0xb0   :  { %4336 = vmatprep.subr.bf16.mxu1 %v4617_v24  ;;  %v2514_v13 = vrot.slane %v2512_v7, 4  ;;  %4310 = vmatprep.mubr.bf16.mxu0 %v3749_v25  ;;  %v2552_v7 = vsel %vm4918_vm2, %v2547_v60, %v2551_v46  ;;  %v2582_v9 = vshrl.u32 %v3723_v0, 16  ;;  %v2585_v10 = vshll.u32 %v3723_v0, 16 }
  0xb1   :  { %v2500_v6 = vrot.slane %v2498_v62, 4  ;;  %v2577_v62 = vshll.u32 %v3722_v48, 16 }
  0xb2   :  { %v2518_v27 = vor.u32 %v2517_v16, %v2514_v13  ;;  %v2591_v13 = vshll.u32 %v3724_v1, 16  ;;  %v2587_v16 = vrot.slane %v2585_v10, 5 }
  0xb3   :  { %4337 = vmatpush3.bf16.msra.mxu1 %v4617_v24  ;;  %v2504_v15 = vor.u32 %v2503_v8, %v2500_v6  ;;  %v2535_v24 = vshll.u32 %v3716_v18, 16  ;;  %v3726_v6 = vld [vmem:[%s5668_s0 + $0x154] sm:$0x1]  ;;  %v2579_v8 = vrot.slane %v2577_v62, 5  ;;  %v2599_v18 = vshll.u32 %v3725_v5, 16 }
  0xb4   :  { %v2519_v36 = vrot.slane %v2518_v27, 4  ;;  %v2593_v22 = vrot.slane %v2591_v13, 5  ;;  %v2605_v35 = vshll.u32 %v3726_v6, 16  ;;  %v3729_v27 = vld [vmem:[%s5668_s0 + $0x160] sm:$0xf] }
  0xb5   :  { %v2505_v26 = vrot.slane %v2504_v15, 4  ;;  %v2537_v31 = vrot.slane %v2535_v24, 5  ;;  %v2584_v15 = vrot.slane %v2582_v9, 4  ;;  %v2624_v40 = vshrl.u32 %v3729_v27, 16 }
  0xb6   :  { %4339 = vmatmul.mubr.bf16.vlgmr.msra.gmra.mrb[16].mxu1 %v4619_v45  ;;  %v2524_v45 = vsel %vm4918_vm2, %v2519_v36, %v2523_v17  ;;  %v2596_v17 = vshrl.u32 %v3725_v5, 16  ;;  %v2607_v30 = vrot.slane %v2605_v35, 5  ;;  %v2627_v41 = vshll.u32 %v3729_v27, 16 }
  0xb7   :  { %4342 = vmatprep.mubr.bf16.mxu1 %v4620_v54  ;;  %v2510_v34 = vsel %vm4918_vm2, %v2505_v26, %v2509_v12  ;;  %v2556_v54 = vrot.slane %v2554_v44, 4  ;;  %v2538_v59 = vsel %vm4918_vm2, %v2533_v52, %v2537_v31  ;;  %v2574_v12 = vor.u32 %v2573_v4, %v2570_v3 }
  0xb8   :  { %v3750_v51 = vcombine.low %v2510_v34, %v2524_v45  ;;  %v3751_v47 = vcombine.low %v2538_v59, %v2552_v7  ;;  %v2588_v24 = vor.u32 %v2587_v16, %v2584_v15  ;;  %v2598_v25 = vrot.slane %v2596_v17, 4 }
  0xb9   :  { %v2560_v2 = vor.u32 %v2559_v55, %v2556_v54  ;;  %v2601_v26 = vrot.slane %v2599_v18, 5  ;;  %v2610_v31 = vshrl.u32 %v3727_v19, 16 }
  0xba   :  { %4311 = vmatmul.mubr.bf16.gmra.mrb[4].mxu0 %v3750_v51  ;;  %v2589_v34 = vrot.slane %v2588_v24, 4 }
  0xbb   :  { %v2561_v11 = vrot.slane %v2560_v2, 4  ;;  %4314 = vmatprep.mubr.bf16.mxu0 %v3751_v47  ;;  %v2602_v36 = vor.u32 %v2601_v26, %v2598_v25  ;;  %v2612_v38 = vrot.slane %v2610_v31, 4 }
  0xbd   :  { %v2566_v20 = vsel %vm4918_vm2, %v2561_v11, %v2565_v56 }
  0xbe   :  { %4343 = vmatmul.mubr.bf16.gmra.mrb[20].mxu1 %v4621_v21  ;;  %v2575_v21 = vrot.slane %v2574_v12, 4 }
  0xbf   :  { %4346 = vmatprep.mubr.bf16.mxu1 %v4622_v33 }
  0xc0   :  { %v2580_v29 = vsel %vm4918_vm2, %v2575_v21, %v2579_v8 }
  0xc1   :  { %v3752_v33 = vcombine.low %v2566_v20, %v2580_v29 }
  0xc6   :  { %4347 = vmatmul.mubr.bf16.gmra.mrb[24].mxu1 %v4623_v63 }
  0xc7   :  { %4350 = vmatprep.mubr.bf16.mxu1 %v4624_v14 }
  0xc8   :  { %14 = vsyncpa [#allocation8], 0  ;;  %4315 = vmatmul.mubr.bf16.gmra.mrb[8].mxu0 %v3752_v33  ;;  %v2594_v42 = vsel %vm4918_vm2, %v2589_v34, %v2593_v22  ;;  %v2603_v43 = vrot.slane %v2602_v36, 4  ;;  %v2633_v44 = vshll.u32 %v3730_v28, 16  ;;  %v4625_v45 = vld [vmem:[%s5668_s0 + $0x228] ss:$8 sps:$4 sm:$0xff]   ;;  %v2616_v46 = vor.u32 %v2615_v39, %v2612_v38 }
  0xc9   :  { %v2621_v48 = vrot.slane %v2619_v37, 5  ;;  %v2626_v49 = vrot.slane %v2624_v40, 4  ;;  %v2629_v50 = vrot.slane %v2627_v41, 5  ;;  %s4720_s0 = smov [#allocation2]  }
  0xca   :  { %v2608_v51 = vsel %vm4918_vm2, %v2603_v43, %v2607_v30  ;;  %v2617_v53 = vrot.slane %v2616_v46, 4  ;;  %v2635_v55 = vrot.slane %v2633_v44, 5  ;;  %s3293_s23 = sshll.u32 %s4720_s0, 4  ;;  %s5606_s23 = int_to_ptr.vmem [resolvable:$true] %s3293_s23 }
  0xcb   :  { %v3753_v52 = vcombine.low %v2594_v42, %v2608_v51  ;;  %v2630_v54 = vor.u32 %v2629_v50, %v2626_v49  ;;  %s4626_s24 = scalar_lea.vmem %s5606_s23, 1024  ;;  %p4631_p1 = scmp.lt.s32.totalorder %s5606_s23, %s5606_s23 }
  0xcc   :  { %v2622_v56 = vsel %vm4918_vm2, %v2617_v53, %v2621_v48  ;;  %p4627_p0 = scmp.ne.s32.totalorder %s5606_s23, %s4626_s24  ;;  %p4632_p2 = scmp.lt.s32.totalorder %s4626_s24, %s4626_s24 }
  0xcd   :  { %4318 = vmatprep.mubr.bf16.mxu0 %v3753_v52  ;;  %v2631_v57 = vrot.slane %v2630_v54, 4 }
  0xce   :  { %4351 = vmatmul.mubr.bf16.gmra.mrb[28].mxu1 %v4625_v45  ;;  %p4633_p3 = por %p4632_p2, %p4631_p1 }
  0xcf   :  { %v2636_v58 = vsel %vm4918_vm2, %v2631_v57, %v2635_v55 }
  0xd0   :  { %v3754_v59 = vcombine.low %v2622_v56, %v2636_v58  ;;  %p4634_p4 = pnand %p4633_p3, %p4627_p0 }
  0xd2   :  { %4319 = vmatmul.mubr.bf16.gmra.mrb[12].mxu0 %v3754_v59 }
 0x169   :  { %v4148_v60 = vpop.f32.mrb[0].mxu1 }
 0x16a   :  { %v1107_v62 = vpop.f32.mrb[1].mxu1 }
 0x16b   :  { %v4149_v63 = vpop.f32.mrb[2].mxu1 }
 0x16c   :  { %v1110_v0 = vpop.f32.mrb[3].mxu1 }
 0x171   :  { %v4152_v1 = vpop.f32.mrb[4].mxu1 }
 0x172   :  { %v5573_v2 = vpop.f32.mrb[5].mxu1 }
 0x173   :  { %v5575_v3 = vpop.f32.mrb[6].mxu1 }
 0x174   :  { %v5577_v4 = vpop.f32.mrb[7].mxu1 }
 0x179   :  { %v5579_v5 = vpop.f32.mrb[8].mxu1 }
 0x17a   :  { %v5581_v6 = vpop.f32.mrb[9].mxu1 }
 0x17b   :  { %v5583_v7 = vpop.f32.mrb[10].mxu1 }
 0x17c   :  { %v5585_v61 = vpop.f32.mrb[11].mxu1 }
 0x17f   :  { %v4308_v11 = vpop.f32.mrb[0].mxu0 }
 0x180   :  { %v4354_v12 = vadd.f32 %v4308_v11, %v4148_v60  ;;  %v2768_v14 = vpop.f32.mrb[1].mxu0 }
 0x181   :  { %v5587_v8 = vpop.f32.mrb[12].mxu1  ;;  %v4355_v15 = vadd.f32 %v2768_v14, %v1107_v62  ;;  %v4309_v17 = vpop.f32.mrb[2].mxu0 }
 0x182   :  { %v5589_v9 = vpop.f32.mrb[13].mxu1  ;;  %v4356_v19 = vadd.f32 %v4309_v17, %v4149_v63  ;;  %v2771_v21 = vpop.f32.mrb[3].mxu0  ;;  %v2951_v33 = vmul.f32 %v4354_v12, %v4354_v12 }
 0x183   :  { %v5591_v10 = vpop.f32.mrb[14].mxu1  ;;  %v4357_v22 = vadd.f32 %v2771_v21, %v1110_v0  ;;  %v2949_v26 = vmul.f32 %v4355_v15, %v4355_v15 }
 0x184   :  { %v5593_v47 = vpop.f32.mrb[15].mxu1  ;;  %v3835_v23 = vpack.c.bf16 %v4356_v19, %v4354_v12  ;;  %v2952_v41 = vmul.f32 %v4356_v19, %v4356_v19 }
 0x185   :  { %v3830_v27 = vpack.c.bf16 %v4357_v22, %v4355_v15  ;;  %v2927_v28 = vadd.f32 %v4357_v22, %v4355_v15  ;;  %v2950_v29 = vmul.f32 %v4357_v22, %v4357_v22 }
 0x186   :  { %3867 = vst [vmem:[#allocation2 + $0x8] sm:$0xff] %v3835_v23  }
 0x187   :  { %3831 = vst [vmem:[#allocation2] sm:$0xff] %v3830_v27   ;;  %v2928_v34 = vadd.f32 %v4354_v12, %v2927_v28  ;;  %v2965_v36 = vadd.f32 %v2950_v29, %v2949_v26 }
 0x189   :  { %v4340_v13 = vpop.f32.mrb[16].mxu1  ;;  %v2966_v42 = vadd.f32 %v2965_v36, %v2951_v33  ;;  %v2929_v43 = vadd.f32 %v4356_v19, %v2928_v34 }
 0x18a   :  { %3214 = vst [vmem:[#allocation6 + $0x10] sm:$0xff] %v4340_v13  ;;  %v3149_v16 = vpop.f32.mrb[17].mxu1  ;;  %v3252_v30 = vmul.f32 %v4340_v13, %v4340_v13 }
 0x18b   :  { %3212 = vst [vmem:[#allocation6] sm:$0xff] %v3149_v16  ;;  %v3250_v18 = vmul.f32 %v3149_v16, %v3149_v16  ;;  %v4341_v20 = vpop.f32.mrb[18].mxu1  ;;  %v2967_v53 = vadd.f32 %v2966_v42, %v2952_v41 }
 0x18c   :  { %3215 = vst [vmem:[#allocation6 + $0x18] sm:$0xff] %v4341_v20  ;;  %v3152_v35 = vpop.f32.mrb[19].mxu1  ;;  %v3253_v37 = vmul.f32 %v4341_v20, %v4341_v20 }
 0x18d   :  { %3213 = vst [vmem:[#allocation6 + $0x8] sm:$0xff] %v3152_v35  ;;  %v3228_v24 = vadd.f32 %v3152_v35, %v3149_v16  ;;  %v3251_v25 = vmul.f32 %v3152_v35, %v3152_v35  ;;  %v4312_v45 = vpop.f32.mrb[4].mxu0 }
 0x18e   :  { %v4358_v51 = vadd.f32 %v4312_v45, %v4152_v1  ;;  %v2784_v52 = vpop.f32.mrb[5].mxu0 }
 0x18f   :  { %v3229_v31 = vadd.f32 %v4340_v13, %v3228_v24  ;;  %v3266_v32 = vadd.f32 %v3251_v25, %v3250_v18  ;;  %v4359_v55 = vadd.f32 %v2784_v52, %v5573_v2  ;;  %v4313_v57 = vpop.f32.mrb[6].mxu0 }
 0x190   :  { %v4360_v60 = vadd.f32 %v4313_v57, %v5575_v3  ;;  %v2787_v62 = vpop.f32.mrb[7].mxu0  ;;  %v2955_v22 = vmul.f32 %v4358_v51, %v4358_v51 }
 0x191   :  { %v3267_v38 = vadd.f32 %v3266_v32, %v3252_v30  ;;  %v4344_v39 = vpop.f32.mrb[20].mxu1  ;;  %v3230_v40 = vadd.f32 %v4341_v20, %v3229_v31  ;;  %v2930_v63 = vadd.f32 %v4359_v55, %v2929_v43  ;;  %v2953_v0 = vmul.f32 %v4359_v55, %v4359_v55 }
 0x192   :  { %3218 = vst [vmem:[#allocation6 + $0x30] sm:$0xff] %v4344_v39  ;;  %v3165_v44 = vpop.f32.mrb[21].mxu1  ;;  %v4361_v11 = vadd.f32 %v2787_v62, %v5577_v4  ;;  %v3256_v1 = vmul.f32 %v4344_v39, %v4344_v39  ;;  %v3845_v13 = vpack.c.bf16 %v4360_v60, %v4358_v51  ;;  %v2956_v28 = vmul.f32 %v4360_v60, %v4360_v60 }
 0x193   :  { %3216 = vst [vmem:[#allocation6 + $0x20] sm:$0xff] %v3165_v44  ;;  %v3231_v46 = vadd.f32 %v3230_v40, %v3165_v44  ;;  %v3254_v48 = vmul.f32 %v3165_v44, %v3165_v44  ;;  %v3268_v49 = vadd.f32 %v3267_v38, %v3253_v37  ;;  %v4345_v50 = vpop.f32.mrb[22].mxu1  ;;  %v2968_v15 = vadd.f32 %v2967_v53, %v2953_v0 }
 0x194   :  { %3219 = vst [vmem:[#allocation6 + $0x38] sm:$0xff] %v4345_v50  ;;  %v3168_v54 = vpop.f32.mrb[23].mxu1  ;;  %v3840_v16 = vpack.c.bf16 %v4361_v11, %v4359_v55  ;;  %v2931_v17 = vadd.f32 %v4361_v11, %v2930_v63  ;;  %v2954_v2 = vmul.f32 %v4361_v11, %v4361_v11  ;;  %3869 = vst [vmem:[#allocation2 + $0x18] sm:$0xff] %v3845_v13  }
 0x195   :  { %v3269_v56 = vadd.f32 %v3268_v49, %v3254_v48  ;;  %3217 = vst [vmem:[#allocation6 + $0x28] sm:$0xff] %v3168_v54  ;;  %v3232_v58 = vadd.f32 %v3231_v46, %v3168_v54  ;;  %v3255_v59 = vmul.f32 %v3168_v54, %v3168_v54  ;;  %v3257_v19 = vmul.f32 %v4345_v50, %v4345_v50 }
 0x196   :  { %3868 = vst [vmem:[#allocation2 + $0x10] sm:$0xff] %v3840_v16   ;;  %v2932_v35 = vadd.f32 %v4358_v51, %v2931_v17  ;;  %v2969_v23 = vadd.f32 %v2968_v15, %v2954_v2 }
 0x197   :  { %v3233_v12 = vadd.f32 %v4344_v39, %v3232_v58  ;;  %v3270_v14 = vadd.f32 %v3269_v56, %v3255_v59 }
 0x198   :  { %v2970_v29 = vadd.f32 %v2969_v23, %v2955_v22  ;;  %v2933_v31 = vadd.f32 %v4360_v60, %v2932_v35 }
 0x199   :  { %v4348_v18 = vpop.f32.mrb[24].mxu1  ;;  %v3271_v20 = vadd.f32 %v3270_v14, %v3256_v1  ;;  %v3234_v3 = vadd.f32 %v4345_v50, %v3233_v12 }
 0x19a   :  { %3222 = vst [vmem:[#allocation6 + $0x50] sm:$0xff] %v4348_v18  ;;  %v3181_v21 = vpop.f32.mrb[25].mxu1  ;;  %v2971_v39 = vadd.f32 %v2970_v29, %v2956_v28  ;;  %v3260_v41 = vmul.f32 %v4348_v18, %v4348_v18 }
 0x19b   :  { %3220 = vst [vmem:[#allocation6 + $0x40] sm:$0xff] %v3181_v21  ;;  %v3258_v4 = vmul.f32 %v3181_v21, %v3181_v21  ;;  %v4349_v24 = vpop.f32.mrb[26].mxu1  ;;  %v3235_v25 = vadd.f32 %v3234_v3, %v3181_v21  ;;  %v3272_v26 = vadd.f32 %v3271_v20, %v3257_v19  ;;  %v4316_v30 = vpop.f32.mrb[8].mxu0 }
 0x19c   :  { %3223 = vst [vmem:[#allocation6 + $0x58] sm:$0xff] %v4349_v24  ;;  %v3184_v27 = vpop.f32.mrb[27].mxu1  ;;  %v4362_v33 = vadd.f32 %v4316_v30, %v5579_v5  ;;  %v2800_v34 = vpop.f32.mrb[9].mxu0  ;;  %v3261_v5 = vmul.f32 %v4349_v24, %v4349_v24 }
 0x19d   :  { %3221 = vst [vmem:[#allocation6 + $0x48] sm:$0xff] %v3184_v27  ;;  %v3259_v32 = vmul.f32 %v3184_v27, %v3184_v27  ;;  %v3273_v36 = vadd.f32 %v3272_v26, %v3258_v4  ;;  %v3236_v37 = vadd.f32 %v3235_v25, %v3184_v27  ;;  %v4363_v38 = vadd.f32 %v2800_v34, %v5581_v6  ;;  %v4317_v40 = vpop.f32.mrb[10].mxu0 }
 0x19e   :  { %v4364_v42 = vadd.f32 %v4317_v40, %v5583_v7  ;;  %v2803_v43 = vpop.f32.mrb[11].mxu0  ;;  %v2959_v62 = vmul.f32 %v4362_v33, %v4362_v33 }
 0x19f   :  { %v3237_v44 = vadd.f32 %v4348_v18, %v3236_v37  ;;  %v3274_v45 = vadd.f32 %v3273_v36, %v3259_v32  ;;  %v2934_v46 = vadd.f32 %v4363_v38, %v2933_v31  ;;  %v2957_v48 = vmul.f32 %v4363_v38, %v4363_v38 }
 0x1a0   :  { %v4365_v49 = vadd.f32 %v2803_v43, %v5585_v61  ;;  %v3855_v51 = vpack.c.bf16 %v4364_v42, %v4362_v33  ;;  %v2960_v1 = vmul.f32 %v4364_v42, %v4364_v42 }
 0x1a1   :  { %v4352_v50 = vpop.f32.mrb[28].mxu1  ;;  %v3275_v52 = vadd.f32 %v3274_v45, %v3260_v41  ;;  %v2972_v54 = vadd.f32 %v2971_v39, %v2957_v48  ;;  %v3238_v7 = vadd.f32 %v4349_v24, %v3237_v44 }
 0x1a2   :  { %3226 = vst [vmem:[#allocation6 + $0x70] sm:$0xff] %v4352_v50  ;;  %v3197_v53 = vpop.f32.mrb[29].mxu1  ;;  %v3850_v6 = vpack.c.bf16 %v4365_v49, %v4363_v38  ;;  %v2935_v55 = vadd.f32 %v4365_v49, %v2934_v46  ;;  %v2958_v56 = vmul.f32 %v4365_v49, %v4365_v49  ;;  %3871 = vst [vmem:[#allocation2 + $0x28] sm:$0xff] %v3855_v51  }
 0x1a3   :  { %3224 = vst [vmem:[#allocation6 + $0x60] sm:$0xff] %v3197_v53  ;;  %v4353_v57 = vpop.f32.mrb[30].mxu1  ;;  %v3262_v58 = vmul.f32 %v3197_v53, %v3197_v53  ;;  %v3276_v59 = vadd.f32 %v3275_v52, %v3261_v5  ;;  %v3239_v11 = vadd.f32 %v3238_v7, %v3197_v53  ;;  %v3264_v17 = vmul.f32 %v4352_v50, %v4352_v50 }
 0x1a4   :  { %3227 = vst [vmem:[#allocation6 + $0x78] sm:$0xff] %v4353_v57  ;;  %v3200_v60 = vpop.f32.mrb[31].mxu1  ;;  %3870 = vst [vmem:[#allocation2 + $0x20] sm:$0xff] %v3850_v6   ;;  %v2936_v61 = vadd.f32 %v4362_v33, %v2935_v55  ;;  %v2973_v63 = vadd.f32 %v2972_v54, %v2958_v56  ;;  %v3265_v35 = vmul.f32 %v4353_v57, %v4353_v57 }
 0x1a5   :  { %3225 = vst [vmem:[#allocation6 + $0x68] sm:$0xff] %v3200_v60  ;;  %v3263_v0 = vmul.f32 %v3200_v60, %v3200_v60  ;;  %v3277_v12 = vadd.f32 %v3276_v59, %v3262_v58  ;;  %v4320_v14 = vpop.f32.mrb[12].mxu0  ;;  %v3240_v18 = vadd.f32 %v3239_v11, %v3200_v60 }
 0x1a6   :  { %v2974_v13 = vadd.f32 %v2973_v63, %v2959_v62  ;;  %v2937_v15 = vadd.f32 %v4364_v42, %v2936_v61  ;;  %v4366_v16 = vadd.f32 %v4320_v14, %v5587_v8  ;;  %v2816_v2 = vpop.f32.mrb[13].mxu0 }
 0x1a7   :  { %v3278_v19 = vadd.f32 %v3277_v12, %v3263_v0  ;;  %v4367_v20 = vadd.f32 %v2816_v2, %v5589_v9  ;;  %v4321_v3 = vpop.f32.mrb[14].mxu0  ;;  %v3241_v4 = vadd.f32 %v4352_v50, %v3240_v18 }
 0x1a8   :  { %v2975_v21 = vadd.f32 %v2974_v13, %v2960_v1  ;;  %v4368_v22 = vadd.f32 %v4321_v3, %v5591_v10  ;;  %v2819_v23 = vpop.f32.mrb[15].mxu0  ;;  %v2963_v34 = vmul.f32 %v4366_v16, %v4366_v16 }
 0x1a9   :  { %v3279_v24 = vadd.f32 %v3278_v19, %v3264_v17  ;;  %v2938_v25 = vadd.f32 %v4367_v20, %v2937_v15  ;;  %v2961_v26 = vmul.f32 %v4367_v20, %v4367_v20  ;;  %v4369_v8 = vadd.f32 %v2819_v23, %v5593_v47 }
 0x1aa   :  { %v3865_v27 = vpack.c.bf16 %v4368_v22, %v4366_v16  ;;  %v3242_v28 = vadd.f32 %v4353_v57, %v3241_v4 }
 0x1ab   :  { %v3280_v29 = vadd.f32 %v3279_v24, %v3265_v35  ;;  %v2976_v9 = vadd.f32 %v2975_v21, %v2961_v26  ;;  %v3860_v30 = vpack.c.bf16 %v4369_v8, %v4367_v20  ;;  %v2939_v31 = vadd.f32 %v4369_v8, %v2938_v25 }
 0x1ac   :  { %v2962_v10 = vmul.f32 %v4369_v8, %v4369_v8  ;;  %3873 = vst [vmem:[#allocation2 + $0x38] sm:$0xff] %v3865_v27   ;;  %v3243_v32 = vrot.slane %v3242_v28, 4 }
 0x1ad   :  { %v3281_v33 = vrot.slane %v3280_v29, 4  ;;  %3872 = vst [vmem:[#allocation2 + $0x30] sm:$0xff] %v3860_v30   ;;  %v2940_v36 = vadd.f32 %v4366_v16, %v2939_v31 }
 0x1ae   :  { %v2977_v37 = vadd.f32 %v2976_v9, %v2962_v10  ;;  %v3244_v47 = vadd.f32 %v3243_v32, %v3242_v28 }
 0x1af   :  { %4637 = shalt.err (!%p4634_p4)
}
 0x1b0   :  { %s4638_s27 = scalar_lea.hbm %s5671_s3, 1024 }
 0x1b1   :  { %p4639_p5 = scmp.ne.s32.totalorder %s5671_s3, %s4638_s27  ;;  %p4642_p6 = scmp.lt.u32.totalorder %s4638_s27, %s5671_s3 }
 0x1b3   :  { %p4644_p7 = pnand %p4642_p6, %p4639_p5 }
 0x1b5   :  { %4647 = shalt.err (!%p4644_p7)
}
 0x1b6   :  { %s4721_s7 = smov 64   ;;  %s4722_s8 = smov 4   ;;  %v3282_v38 = vadd.f32 %v3281_v33, %v3280_v29  ;;  %v2964_v39 = vmul.f32 %v4368_v22, %v4368_v22  ;;  %v2978_v40 = vadd.f32 %v2977_v37, %v2963_v34  ;;  %v2941_v41 = vadd.f32 %v4368_v22, %v2940_v36 }
 0x1b7   :  { %3299 = dma.vmem_to_hbm [thread:$0]  %s5606_s23, 1024, %s5671_s3, [#allocation3], %s4721_s7, %s4721_s7, %s4722_s8   ;;  %v3245_v42 = vrot.slane %v3244_v47, 2 }
 0x1b8   :  { %v3283_v43 = vrot.slane %v3282_v38, 2  ;;  %v2942_v44 = vrot.slane %v2941_v41, 4  ;;  %v2979_v45 = vadd.f32 %v2978_v40, %v2964_v39  ;;  %s4723_s11 = smov [#allocation7]  }
 0x1b9   :  { %v3246_v46 = vadd.f32 %v3245_v42, %v3244_v47  ;;  %s3328_s12 = sshll.u32 %s4723_s11, 4  ;;  %s3329_s12 = int_to_ptr.vmem [resolvable:$true] %s3328_s12 }
 0x1ba   :  { %v3284_v48 = vadd.f32 %v3283_v43, %v3282_v38  ;;  %v2943_v49 = vadd.f32 %v2942_v44, %v2941_v41  ;;  %v2980_v50 = vrot.slane %v2979_v45, 4  ;;  %s4648_s3 = scalar_lea.vmem %s3329_s12, 32  ;;  %p4653_p9 = scmp.lt.s32.totalorder %s3329_s12, %s3329_s12 }
 0x1bb   :  { %v3247_v51 = vrot.slane %v3246_v46, 1  ;;  %p4649_p8 = scmp.ne.s32.totalorder %s3329_s12, %s4648_s3  ;;  %p4654_p10 = scmp.lt.s32.totalorder %s4648_s3, %s4648_s3 }
 0x1bc   :  { %v3285_v5 = vrot.slane %v3284_v48, 1  ;;  %v2944_v52 = vrot.slane %v2943_v49, 2  ;;  %v2981_v53 = vadd.f32 %v2980_v50, %v2979_v45 }
 0x1bd   :  { %v3248_v54 = vadd.f32 %v3247_v51, %v3246_v46  ;;  %p4655_p11 = por %p4654_p10, %p4653_p9 }
 0x1be   :  { %v3286_v6 = vadd.f32 %v3285_v5, %v3284_v48  ;;  %v2945_v55 = vadd.f32 %v2944_v52, %v2943_v49  ;;  %v2982_v56 = vrot.slane %v2981_v53, 2 }
 0x1bf   :  { %3249 = vst [vmem:[#allocation7] sm:$0x1] %v3248_v54  ;;  %p4656_p12 = pnand %p4655_p11, %p4649_p8 }
 0x1c0   :  { %3287 = vst [vmem:[#allocation7 + $0x1] sm:$0x1] %v3286_v6  ;;  %v2946_v57 = vrot.slane %v2945_v55, 1  ;;  %v2983_v7 = vadd.f32 %v2982_v56, %v2981_v53 }
 0x1c1   :  { %4659 = shalt.err (!%p4656_p12)
}
 0x1c2   :  { %s4660_s15 = scalar_lea.hbm %s5674_s6, 32 }
 0x1c3   :  { %p4661_p13 = scmp.ne.s32.totalorder %s5674_s6, %s4660_s15  ;;  %p4664_p0 = scmp.lt.u32.totalorder %s4660_s15, %s5674_s6 }
 0x1c5   :  { %p4666_p1 = pnand %p4664_p0, %p4661_p13 }
 0x1c7   :  { %4669 = shalt.err (!%p4666_p1)
}
 0x1c8   :  { %3331 = dma.vmem_to_hbm [thread:$0]  %s3329_s12, 32, %s5674_s6, [#allocation8]   ;;  %v2947_v58 = vadd.f32 %v2946_v57, %v2945_v55  ;;  %v2984_v59 = vrot.slane %v2983_v7, 1 }
 0x1c9   :  { %s4724_s21 = smov [#allocation4]   ;;  %s4725_s0 = smov [#allocation6]  }
 0x1ca   :  { %s3306_s22 = sshll.u32 %s4724_s21, 4  ;;  %s3315_s23 = sshll.u32 %s4725_s0, 4  ;;  %2948 = vst [vmem:[#allocation4] sm:$0x1] %v2947_v58  ;;  %v2985_v60 = vadd.f32 %v2984_v59, %v2983_v7  ;;  %s3307_s22 = int_to_ptr.vmem [resolvable:$true] %s3306_s22  ;;  %s5637_s23 = int_to_ptr.vmem [resolvable:$true] %s3315_s23 }
 0x1cb   :  { %s4670_s24 = scalar_lea.vmem %s3307_s22, 32  ;;  %p4675_p3 = scmp.lt.s32.totalorder %s3307_s22, %s3307_s22 }
 0x1cc   :  { %2986 = vst [vmem:[#allocation4 + $0x1] sm:$0x1] %v2985_v60  ;;  %p4671_p2 = scmp.ne.s32.totalorder %s3307_s22, %s4670_s24  ;;  %p4676_p4 = scmp.lt.s32.totalorder %s4670_s24, %s4670_s24 }
 0x1ce   :  { %p4677_p5 = por %p4676_p4, %p4675_p3 }
 0x1d0   :  { %p4678_p6 = pnand %p4677_p5, %p4671_p2 }
 0x1d2   :  { %4681 = shalt.err (!%p4678_p6)
}
 0x1d3   :  { %s4682_s26 = scalar_lea.hbm %s5672_s4, 32 }
 0x1d4   :  { %p4683_p7 = scmp.ne.s32.totalorder %s5672_s4, %s4682_s26  ;;  %p4686_p8 = scmp.lt.u32.totalorder %s4682_s26, %s5672_s4 }
 0x1d6   :  { %p4688_p9 = pnand %p4686_p8, %p4683_p7 }
 0x1d8   :  { %4691 = shalt.err (!%p4688_p9)
}
 0x1d9   :  { %3309 = dma.vmem_to_hbm [thread:$0]  %s3307_s22, 32, %s5672_s4, [#allocation5]  }
 0x1da   :  { %s4692_s8 = scalar_lea.vmem %s5637_s23, 2048  ;;  %p4697_p11 = scmp.lt.s32.totalorder %s5637_s23, %s5637_s23 }
 0x1db   :  { %p4693_p10 = scmp.ne.s32.totalorder %s5637_s23, %s4692_s8  ;;  %p4698_p12 = scmp.lt.s32.totalorder %s4692_s8, %s4692_s8 }
 0x1dd   :  { %p4699_p13 = por %p4698_p12, %p4697_p11 }
 0x1df   :  { %p4700_p0 = pnand %p4699_p13, %p4693_p10 }
 0x1e1   :  { %4703 = shalt.err (!%p4700_p0)
}
 0x1e2   :  { %s4704_s11 = scalar_lea.hbm %s5673_s5, 2048 }
 0x1e3   :  { %p4705_p1 = scmp.ne.s32.totalorder %s5673_s5, %s4704_s11  ;;  %p4708_p2 = scmp.lt.u32.totalorder %s4704_s11, %s5673_s5 }
 0x1e5   :  { %p4710_p3 = pnand %p4708_p2, %p4705_p1 }
 0x1e7   :  { %4713 = shalt.err (!%p4710_p3)
}
 0x1e8   :  { %s4726_s4 = smov 128   ;;  %s4727_s15 = smov 8  }
 0x1e9   :  { %3321 = dma.vmem_to_hbm [thread:$0]  %s5637_s23, 2048, %s5673_s5, [#allocation5], %s4726_s4, %s4726_s4, %s4727_s15  }
 0x1ea   :  { %4714 = dma.done.wait [#allocation3], 1024  }
 0x1eb   :  { %4715 = vsyncadd [#allocation3], 4294966272 }
 0x1ec   :  { %4716 = dma.done.wait [#allocation5], 2080  }
 0x1ed   :  { %4717 = vsyncadd [#allocation5], 4294965216 }
 0x1ee   :  { %4718 = dma.done.wait [#allocation8], 32  }
 0x1ef   :  { %4719 = vsyncadd [#allocation8], 4294967264 }
 0x1f0   :  { %3344 = vsyncpa [#allocation3], 1 }
 0x1f1   :  { %3345 = vsyncpa [#allocation5], 1 }
 0x1f2   :  { %3346 = vsyncpa [#allocation8], 1 }

</bundles_post_ra>
